<compile_context>
chip_gen: v7x
topology: tpu7x:2x2x1
jax: 0.10.0
libtpu: 0.0.40
codegen_flags: <defaults>
</compile_context>

<pallas_src>
import functools

import jax
import jax.numpy as jnp
from jax.experimental import pallas as pl
from jax.experimental.pallas import tpu as pltpu

# Original and lane-dense (padded) layer widths.
D_IN = 784                    # kernel consumes K=784 directly (full array dim)
H1, H1_PAD = 400, 512
H2, H2_PAD = 200, 256
H3, H3_PAD = 100, 128
D_OUT, D_OUT_PAD = 10, 128


def _round_up(x, m):
    return (x + m - 1) // m * m


def _cdiv(a, b):
    return -(-a // b)


def mlp_kernel(x_ref, w1_ref, b1_ref, w2_ref, b2_ref,
               w3_ref, b3_ref, w4_ref, b4_ref, o_ref):
    """Fused 4-layer MLP forward on one (TB, 784) f32 batch tile.

    The f32->bf16 cast of x happens here (no extra HBM pass).  Weights are
    bf16 and VMEM-resident across grid steps (constant index_map).  Matmuls
    accumulate in f32 on the MXU; bias-add + ReLU run on the VPU in f32.
    """
    x = x_ref[...].astype(jnp.bfloat16)          # in-kernel cast, K = 784

    h = jnp.dot(x, w1_ref[...],
                preferred_element_type=jnp.float32) + b1_ref[...]
    h = jnp.maximum(h, 0.0).astype(jnp.bfloat16)

    h = jnp.dot(h, w2_ref[...],
                preferred_element_type=jnp.float32) + b2_ref[...]
    h = jnp.maximum(h, 0.0).astype(jnp.bfloat16)

    h = jnp.dot(h, w3_ref[...],
                preferred_element_type=jnp.float32) + b3_ref[...]
    h = jnp.maximum(h, 0.0).astype(jnp.bfloat16)

    o_ref[...] = (jnp.dot(h, w4_ref[...],
                          preferred_element_type=jnp.float32)
                  + b4_ref[...]).astype(o_ref.dtype)


def init_params(key):
    """Deterministic init matching torch.nn.Linear shapes (stored as (in, out))."""
    dims = [(D_IN, H1), (H1, H2), (H2, H3), (H3, D_OUT)]
    params = {}
    for i, (d_in, d_out) in enumerate(dims, start=1):
        key, kw, kb = jax.random.split(key, 3)
        bound = 1.0 / jnp.sqrt(d_in)
        params[f"w{i}"] = jax.random.uniform(
            kw, (d_in, d_out), jnp.float32, -bound, bound)
        params[f"b{i}"] = jax.random.uniform(
            kb, (1, d_out), jnp.float32, -bound, bound)
    return params


def prepare_params(params):
    """Zero-pad layer widths to lane multiples and cast weights to bf16.

    Layer-1 input dim stays 784 (the kernel contracts K=784 directly); only
    output dims and downstream input dims are padded.  Padding keeps the math
    exact: padded hidden units get bias 0 and stay 0 through ReLU, and the
    padded rows of the next weight are zero, so they contribute nothing.
    Biases stay f32 (tiny, and bias-add/ReLU run in f32).
    """
    dims = [(D_IN, D_IN, H1, H1_PAD),        # w1: no input padding
            (H1, H1_PAD, H2, H2_PAD),
            (H2, H2_PAD, H3, H3_PAD),
            (H3, H3_PAD, D_OUT, D_OUT_PAD)]
    prepped = {}
    for i, (din, din_p, dout, dout_p) in enumerate(dims, start=1):
        w = params[f"w{i}"].astype(jnp.bfloat16)
        b = params[f"b{i}"].astype(jnp.float32)
        prepped[f"w{i}"] = jnp.zeros((din_p, dout_p), jnp.bfloat16
                                     ).at[:din, :dout].set(w)
        prepped[f"b{i}"] = jnp.zeros((1, dout_p), jnp.float32
                                     ).at[:, :dout].set(b)
    return prepped


@functools.partial(jax.jit, static_argnames=("tb", "LinBP"))
def mlp_forward(x, prepped, tb=512, LinBP=False):
    """x: (B, 784) f32.  prepped: output of prepare_params.  Returns (B, 10) f32."""
    del LinBP  # forward values identical for both branches (see header note)
    B = x.shape[0]

    # Batch tile: multiple of 8 sublanes, capped at `tb`.  Small batches use
    # one small tile; large batches get big tiles (amortize ~0.35 us/step).
    TB = min(tb, _round_up(max(B, 8), 8))
    if B > 256:
        # v7x megacore: keep >= 2 "parallel" grid steps so both TCs get work.
        TB = min(TB, _round_up(_cdiv(_round_up(B, 8), 2), 8))
    B_pad = _round_up(B, TB)

    # Only pad batch rows (no feature padding, no dtype cast -> single HBM read
    # of x by the kernel).  Padded rows produce garbage logits; sliced off below.
    if B_pad != B:
        x = jnp.pad(x, ((0, B_pad - B), (0, 0)))

    w1, b1 = prepped["w1"], prepped["b1"]
    w2, b2 = prepped["w2"], prepped["b2"]
    w3, b3 = prepped["w3"], prepped["b3"]
    w4, b4 = prepped["w4"], prepped["b4"]

    # Weights/biases: full-array blocks with constant index_map -> DMA'd once,
    # resident in VMEM for every grid step.
    const = lambda a: pl.BlockSpec(a.shape, lambda i: (0,) * a.ndim)

    vmem_limit = (32 << 20) if TB >= 512 else (16 << 20)

    out_pad = pl.pallas_call(
        mlp_kernel,
        out_shape=jax.ShapeDtypeStruct((B_pad, D_OUT_PAD), jnp.bfloat16),
        grid=(B_pad // TB,),
        in_specs=[pl.BlockSpec((TB, D_IN), lambda i: (i, 0)),  # raw f32 x tile
                  const(w1), const(b1),
                  const(w2), const(b2),
                  const(w3), const(b3),
                  const(w4), const(b4)],
        out_specs=pl.BlockSpec((TB, D_OUT_PAD), lambda i: (i, 0)),
        compiler_params=pltpu.CompilerParams(
            dimension_semantics=("parallel",),   # shard batch tiles across v7x TCs
            vmem_limit_bytes=vmem_limit),
    )(x, w1, b1, w2, b2, w3, b3, w4, b4)

    return out_pad[:B, :D_OUT].astype(jnp.float32)


def mlp_reference_bf16(x, prepped):
    """Pure-JAX mirror of the kernel math (bf16 operands, f32 accumulation)."""
    h = x.astype(jnp.bfloat16)
    for i in range(1, 4):
        h = jnp.dot(h, prepped[f"w{i}"],
                    preferred_element_type=jnp.float32) + prepped[f"b{i}"]
        h = jnp.maximum(h, 0.0).astype(jnp.bfloat16)
    out = jnp.dot(h, prepped["w4"],
                  preferred_element_type=jnp.float32) + prepped["b4"]
    return out[:, :D_OUT]


def mlp_reference_f32(x, params):
    """Full-precision reference of the original module's forward pass."""
    h = x
    for i in range(1, 4):
        h = jnp.maximum(h @ params[f"w{i}"] + params[f"b{i}"], 0.0)
    return h @ params["w4"] + params["b4"]


if __name__ == "__main__":
    key = jax.random.PRNGKey(0)
    kx, kp = jax.random.split(key)
    batch = 8
    x = jax.random.normal(kx, (batch, D_IN), jnp.float32)

    params = init_params(kp)
    prepped = prepare_params(params)

    out = jax.block_until_ready(mlp_forward(x, prepped, LinBP=False))
    assert out.shape == (batch, D_OUT), out.shape

    # Tight check against a reference that mirrors the kernel's bf16/f32 math.
    ref_bf16 = mlp_reference_bf16(x, prepped)
    assert jnp.allclose(out, ref_bf16, atol=2e-2, rtol=2e-2), "mismatch vs bf16 ref"

    # Looser sanity check against the full-f32 PyTorch-equivalent forward.
    ref_f32 = mlp_reference_f32(x, params)
    assert jnp.allclose(out, ref_f32, atol=1e-1, rtol=1e-1), "mismatch vs f32 ref"

    print("KERNEL_OK")
</pallas_src>

<mosaic_0001>
module attributes {stable_mosaic.version = 11 : i64} {
  func.func @mlp_kernel(%arg0: i32, %arg1: memref<8x784xf32, #tpu.memory_space<vmem>>, %arg2: memref<784x512xbf16, #tpu.memory_space<vmem>>, %arg3: memref<1x512xf32, #tpu.memory_space<vmem>>, %arg4: memref<512x256xbf16, #tpu.memory_space<vmem>>, %arg5: memref<1x256xf32, #tpu.memory_space<vmem>>, %arg6: memref<256x128xbf16, #tpu.memory_space<vmem>>, %arg7: memref<1x128xf32, #tpu.memory_space<vmem>>, %arg8: memref<128x128xbf16, #tpu.memory_space<vmem>>, %arg9: memref<1x128xf32, #tpu.memory_space<vmem>>, %arg10: memref<8x128xbf16, #tpu.memory_space<vmem>>) attributes {dimension_semantics = [#tpu.dimension_semantics<parallel>], iteration_bounds = array<i64: 1>, scalar_prefetch = 0 : i64, scratch_operands = 0 : i64, tpu.core_type = #tpu.core_type<tc>, window_params = [{transform_indices = @transform_0, window_bounds = array<i64: 8, 784>}, {pipeline_mode = #tpu.pipeline_mode<synchronous>, transform_indices = @transform_1, window_bounds = array<i64: 784, 512>}, {pipeline_mode = #tpu.pipeline_mode<synchronous>, transform_indices = @transform_2, window_bounds = array<i64: 1, 512>}, {pipeline_mode = #tpu.pipeline_mode<synchronous>, transform_indices = @transform_3, window_bounds = array<i64: 512, 256>}, {pipeline_mode = #tpu.pipeline_mode<synchronous>, transform_indices = @transform_4, window_bounds = array<i64: 1, 256>}, {pipeline_mode = #tpu.pipeline_mode<synchronous>, transform_indices = @transform_5, window_bounds = array<i64: 256, 128>}, {pipeline_mode = #tpu.pipeline_mode<synchronous>, transform_indices = @transform_6, window_bounds = array<i64: 1, 128>}, {pipeline_mode = #tpu.pipeline_mode<synchronous>, transform_indices = @transform_7, window_bounds = array<i64: 128, 128>}, {pipeline_mode = #tpu.pipeline_mode<synchronous>, transform_indices = @transform_8, window_bounds = array<i64: 1, 128>}, {transform_indices = @transform_9, window_bounds = array<i64: 8, 128>}]} {
    %c0 = arith.constant 0 : index
    %c0_0 = arith.constant 0 : index
    %0 = vector.load %arg1[%c0, %c0_0] : memref<8x784xf32, #tpu.memory_space<vmem>>, vector<8x784xf32>
    %1 = arith.truncf %0 : vector<8x784xf32> to vector<8x784xbf16>
    %c0_1 = arith.constant 0 : index
    %c0_2 = arith.constant 0 : index
    %2 = vector.load %arg2[%c0_1, %c0_2] : memref<784x512xbf16, #tpu.memory_space<vmem>>, vector<784x512xbf16>
    %cst = arith.constant dense<0.000000e+00> : vector<8x512xf32>
    %3 = tpu.matmul %1, %2, %cst {dimension_numbers = #tpu.dot_dimension_numbers<[1], [0], [0], [1], [0, 0, 1, 1], [], []>} : vector<8x784xbf16>, vector<784x512xbf16>, vector<8x512xf32> -> vector<8x512xf32>
    %c0_3 = arith.constant 0 : index
    %c0_4 = arith.constant 0 : index
    %4 = vector.load %arg3[%c0_3, %c0_4] : memref<1x512xf32, #tpu.memory_space<vmem>>, vector<1x512xf32>
    %5 = vector.broadcast %4 : vector<1x512xf32> to vector<8x512xf32>
    %6 = arith.addf %3, %5 : vector<8x512xf32>
    %cst_5 = arith.constant 0.000000e+00 : f32
    %7 = vector.broadcast %cst_5 : f32 to vector<8x512xf32>
    %8 = arith.maximumf %6, %7 : vector<8x512xf32>
    %9 = arith.truncf %8 : vector<8x512xf32> to vector<8x512xbf16>
    %c0_6 = arith.constant 0 : index
    %c0_7 = arith.constant 0 : index
    %10 = vector.load %arg4[%c0_6, %c0_7] : memref<512x256xbf16, #tpu.memory_space<vmem>>, vector<512x256xbf16>
    %cst_8 = arith.constant dense<0.000000e+00> : vector<8x256xf32>
    %11 = tpu.matmul %9, %10, %cst_8 {dimension_numbers = #tpu.dot_dimension_numbers<[1], [0], [0], [1], [0, 0, 1, 1], [], []>} : vector<8x512xbf16>, vector<512x256xbf16>, vector<8x256xf32> -> vector<8x256xf32>
    %c0_9 = arith.constant 0 : index
    %c0_10 = arith.constant 0 : index
    %12 = vector.load %arg5[%c0_9, %c0_10] : memref<1x256xf32, #tpu.memory_space<vmem>>, vector<1x256xf32>
    %13 = vector.broadcast %12 : vector<1x256xf32> to vector<8x256xf32>
    %14 = arith.addf %11, %13 : vector<8x256xf32>
    %cst_11 = arith.constant 0.000000e+00 : f32
    %15 = vector.broadcast %cst_11 : f32 to vector<8x256xf32>
    %16 = arith.maximumf %14, %15 : vector<8x256xf32>
    %17 = arith.truncf %16 : vector<8x256xf32> to vector<8x256xbf16>
    %c0_12 = arith.constant 0 : index
    %c0_13 = arith.constant 0 : index
    %18 = vector.load %arg6[%c0_12, %c0_13] : memref<256x128xbf16, #tpu.memory_space<vmem>>, vector<256x128xbf16>
    %cst_14 = arith.constant dense<0.000000e+00> : vector<8x128xf32>
    %19 = tpu.matmul %17, %18, %cst_14 {dimension_numbers = #tpu.dot_dimension_numbers<[1], [0], [0], [1], [0, 0, 1, 1], [], []>} : vector<8x256xbf16>, vector<256x128xbf16>, vector<8x128xf32> -> vector<8x128xf32>
    %c0_15 = arith.constant 0 : index
    %c0_16 = arith.constant 0 : index
    %20 = vector.load %arg7[%c0_15, %c0_16] : memref<1x128xf32, #tpu.memory_space<vmem>>, vector<1x128xf32>
    %21 = vector.broadcast %20 : vector<1x128xf32> to vector<8x128xf32>
    %22 = arith.addf %19, %21 : vector<8x128xf32>
    %cst_17 = arith.constant 0.000000e+00 : f32
    %23 = vector.broadcast %cst_17 : f32 to vector<8x128xf32>
    %24 = arith.maximumf %22, %23 : vector<8x128xf32>
    %25 = arith.truncf %24 : vector<8x128xf32> to vector<8x128xbf16>
    %c0_18 = arith.constant 0 : index
    %c0_19 = arith.constant 0 : index
    %26 = vector.load %arg8[%c0_18, %c0_19] : memref<128x128xbf16, #tpu.memory_space<vmem>>, vector<128x128xbf16>
    %cst_20 = arith.constant dense<0.000000e+00> : vector<8x128xf32>
    %27 = tpu.matmul %25, %26, %cst_20 {dimension_numbers = #tpu.dot_dimension_numbers<[1], [0], [0], [1], [0, 0, 1, 1], [], []>} : vector<8x128xbf16>, vector<128x128xbf16>, vector<8x128xf32> -> vector<8x128xf32>
    %c0_21 = arith.constant 0 : index
    %c0_22 = arith.constant 0 : index
    %28 = vector.load %arg9[%c0_21, %c0_22] : memref<1x128xf32, #tpu.memory_space<vmem>>, vector<1x128xf32>
    %29 = vector.broadcast %28 : vector<1x128xf32> to vector<8x128xf32>
    %30 = arith.addf %27, %29 : vector<8x128xf32>
    %31 = arith.truncf %30 : vector<8x128xf32> to vector<8x128xbf16>
    %c0_23 = arith.constant 0 : index
    %c0_24 = arith.constant 0 : index
    %32 = vector.load %arg10[%c0_23, %c0_24] : memref<8x128xbf16, #tpu.memory_space<vmem>>, vector<8x128xbf16>
    tpu.vector_store %arg10[%c0_23, %c0_24], %31 {strides = array<i32>} : memref<8x128xbf16, #tpu.memory_space<vmem>>, vector<8x128xbf16>,
    return
  }
  func.func @transform_0(%arg0: i32) -> (i32, i32) {
    %c0_i32 = arith.constant 0 : i32
    %c0_i32_0 = arith.constant 0 : i32
    return %arg0, %c0_i32 : i32, i32
  }
  func.func @transform_1(%arg0: i32) -> (i32, i32) {
    %c0_i32 = arith.constant 0 : i32
    %c0_i32_0 = arith.constant 0 : i32
    %c0_i32_1 = arith.constant 0 : i32
    return %c0_i32, %c0_i32_0 : i32, i32
  }
  func.func @transform_2(%arg0: i32) -> (i32, i32) {
    %c0_i32 = arith.constant 0 : i32
    %c0_i32_0 = arith.constant 0 : i32
    %c0_i32_1 = arith.constant 0 : i32
    return %c0_i32, %c0_i32_0 : i32, i32
  }
  func.func @transform_3(%arg0: i32) -> (i32, i32) {
    %c0_i32 = arith.constant 0 : i32
    %c0_i32_0 = arith.constant 0 : i32
    %c0_i32_1 = arith.constant 0 : i32
    return %c0_i32, %c0_i32_0 : i32, i32
  }
  func.func @transform_4(%arg0: i32) -> (i32, i32) {
    %c0_i32 = arith.constant 0 : i32
    %c0_i32_0 = arith.constant 0 : i32
    %c0_i32_1 = arith.constant 0 : i32
    return %c0_i32, %c0_i32_0 : i32, i32
  }
  func.func @transform_5(%arg0: i32) -> (i32, i32) {
    %c0_i32 = arith.constant 0 : i32
    %c0_i32_0 = arith.constant 0 : i32
    %c0_i32_1 = arith.constant 0 : i32
    return %c0_i32, %c0_i32_0 : i32, i32
  }
  func.func @transform_6(%arg0: i32) -> (i32, i32) {
    %c0_i32 = arith.constant 0 : i32
    %c0_i32_0 = arith.constant 0 : i32
    %c0_i32_1 = arith.constant 0 : i32
    return %c0_i32, %c0_i32_0 : i32, i32
  }
  func.func @transform_7(%arg0: i32) -> (i32, i32) {
    %c0_i32 = arith.constant 0 : i32
    %c0_i32_0 = arith.constant 0 : i32
    %c0_i32_1 = arith.constant 0 : i32
    return %c0_i32, %c0_i32_0 : i32, i32
  }
  func.func @transform_8(%arg0: i32) -> (i32, i32) {
    %c0_i32 = arith.constant 0 : i32
    %c0_i32_0 = arith.constant 0 : i32
    %c0_i32_1 = arith.constant 0 : i32
    return %c0_i32, %c0_i32_0 : i32, i32
  }
  func.func @transform_9(%arg0: i32) -> (i32, i32) {
    %c0_i32 = arith.constant 0 : i32
    %c0_i32_0 = arith.constant 0 : i32
    return %arg0, %c0_i32 : i32, i32
  }
}

</mosaic_0001>

<bundles_post_ra>
// kernel: mlp_forward.1
= control target key start
LH: loop header
LB: loop body
LE: loop exit
PB: predicated region body
PF: predicated region fallthrough
CT: control target
= control target key end

     0   :  { %14 = vsyncpa [#allocation3], 0  ;;  %s3566_s0 = inlined_call_operand.hbm [shape: f32[8,784], index: 0, kind: input, shape index: {}]   ;;  %s3567_s1 = inlined_call_operand.hbm [shape: bf16[784,512], index: 1, kind: input, shape index: {}]   ;;  %s3568_s2 = inlined_call_operand.hbm [shape: f32[1,512], index: 2, kind: input, shape index: {}]   ;;  %s3569_s3 = inlined_call_operand.hbm [shape: bf16[512,256], index: 3, kind: input, shape index: {}]   ;;  %s3570_s4 = inlined_call_operand.vmem [shape: f32[1,256], index: 4, kind: input, shape index: {}]   ;;  %s3571_s5 = inlined_call_operand.hbm [shape: bf16[256,128], index: 5, kind: input, shape index: {}]   ;;  %s3572_s6 = inlined_call_operand.vmem [shape: f32[1,128], index: 6, kind: input, shape index: {}]   ;;  %s3573_s7 = inlined_call_operand.hbm [shape: bf16[128,128], index: 7, kind: input, shape index: {}]   ;;  %s3574_s8 = inlined_call_operand.vmem [shape: f32[1,128], index: 8, kind: input, shape index: {}]   ;;  %s3575_s9 = inlined_call_operand.vmem [shape: bf16[8,128], index: 9, kind: output, shape index: {}]  }
   0x1   :  { %15 = vsyncpa [#allocation5], 0 }
   0x2   :  { %16 = vsyncpa [#allocation8], 0 }
   0x3   :  { %17 = vsyncpa [#allocation11], 0  ;;  %s3383_s30 = smov [#allocation4]   ;;  %s3243_s13 = scalar_lea.hbm %s3567_s1, 25088 }
   0x4   :  { %s33_s10 = sshll.u32 %s3383_s30, 4  ;;  %p3244_p0 = scmp.ne.s32.totalorder %s3567_s1, %s3243_s13  ;;  %s34_s10 = int_to_ptr.vmem [resolvable:$true] %s33_s10 }
   0x5   :  { %p3247_p1 = scmp.lt.u32.totalorder %s3243_s13, %s3567_s1 }
   0x7   :  { %p3249_p2 = pnand %p3247_p1, %p3244_p0 }
   0x9   :  { %3252 = shalt.err (!%p3249_p2)
}
   0xa   :  { %s3253_s18 = scalar_lea.vmem %s34_s10, 25088  ;;  %p3258_p4 = scmp.lt.s32.totalorder %s34_s10, %s34_s10 }
   0xb   :  { %p3254_p3 = scmp.ne.s32.totalorder %s34_s10, %s3253_s18  ;;  %p3259_p5 = scmp.lt.s32.totalorder %s3253_s18, %s3253_s18 }
   0xd   :  { %p3260_p6 = por %p3259_p5, %p3258_p4 }
   0xf   :  { %p3261_p7 = pnand %p3260_p6, %p3254_p3 }
  0x11   :  { %3264 = shalt.err (!%p3261_p7)
}
  0x12   :  { %s3384_s19 = smov 256   ;;  %s3385_s20 = smov 16  }
  0x13   :  { %39 = dma.hbm_to_vmem [thread:$0]  %s3567_s1, 25088, %s34_s10, [#allocation5], %s3384_s19, %s3384_s19, %s3385_s20  }
  0x14   :  { %s3386_s23 = smov [#allocation7]   ;;  %s3265_s27 = scalar_lea.hbm %s3569_s3, 8192 }
  0x15   :  { %s55_s24 = sshll.u32 %s3386_s23, 4  ;;  %p3266_p8 = scmp.ne.s32.totalorder %s3569_s3, %s3265_s27  ;;  %s56_s24 = int_to_ptr.vmem [resolvable:$true] %s55_s24 }
  0x16   :  { %p3269_p9 = scmp.lt.u32.totalorder %s3265_s27, %s3569_s3 }
  0x18   :  { %p3271_p10 = pnand %p3269_p9, %p3266_p8 }
  0x1a   :  { %3274 = shalt.err (!%p3271_p10)
}
  0x1b   :  { %s3275_s12 = scalar_lea.vmem %s56_s24, 8192  ;;  %p3280_p12 = scmp.lt.s32.totalorder %s56_s24, %s56_s24 }
  0x1c   :  { %p3276_p11 = scmp.ne.s32.totalorder %s56_s24, %s3275_s12  ;;  %p3281_p13 = scmp.lt.s32.totalorder %s3275_s12, %s3275_s12 }
  0x1e   :  { %p3282_p0 = por %p3281_p13, %p3280_p12 }
  0x20   :  { %p3283_p1 = pnand %p3282_p0, %p3276_p11 }
  0x22   :  { %3286 = shalt.err (!%p3283_p1)
}
  0x23   :  { %s3387_s1 = smov 128   ;;  %s3388_s10 = smov 8  }
  0x24   :  { %61 = dma.hbm_to_vmem [thread:$0]  %s3569_s3, 8192, %s56_s24, [#allocation8], %s3387_s1, %s3387_s1, %s3388_s10  }
  0x25   :  { %s3389_s15 = smov [#allocation2]   ;;  %s3390_s17 = smov [#allocation6]  }
  0x26   :  { %s24_s16 = sshll.u32 %s3389_s15, 4  ;;  %s46_s18 = sshll.u32 %s3390_s17, 4  ;;  %s25_s16 = int_to_ptr.vmem [resolvable:$true] %s24_s16  ;;  %s47_s18 = int_to_ptr.vmem [resolvable:$true] %s46_s18 }
  0x27   :  { %s3287_s21 = scalar_lea.hbm %s3566_s0, 896 }
  0x28   :  { %p3288_p2 = scmp.ne.s32.totalorder %s3566_s0, %s3287_s21  ;;  %p3291_p3 = scmp.lt.u32.totalorder %s3287_s21, %s3566_s0 }
  0x2a   :  { %p3293_p4 = pnand %p3291_p3, %p3288_p2 }
  0x2c   :  { %3296 = shalt.err (!%p3293_p4)
}
  0x2d   :  { %s3297_s3 = scalar_lea.vmem %s25_s16, 896  ;;  %p3302_p6 = scmp.lt.s32.totalorder %s25_s16, %s25_s16 }
  0x2e   :  { %p3298_p5 = scmp.ne.s32.totalorder %s25_s16, %s3297_s3  ;;  %p3303_p7 = scmp.lt.s32.totalorder %s3297_s3, %s3297_s3 }
  0x30   :  { %p3304_p8 = por %p3303_p7, %p3302_p6 }
  0x32   :  { %p3305_p9 = pnand %p3304_p8, %p3298_p5 }
  0x34   :  { %3308 = shalt.err (!%p3305_p9)
}
  0x35   :  { %27 = dma.hbm_to_vmem [thread:$0]  %s3566_s0, 896, %s25_s16, [#allocation3]  }
  0x36   :  { %s3309_s30 = scalar_lea.hbm %s3568_s2, 64 }
  0x37   :  { %p3310_p10 = scmp.ne.s32.totalorder %s3568_s2, %s3309_s30  ;;  %p3313_p11 = scmp.lt.u32.totalorder %s3309_s30, %s3568_s2 }
  0x39   :  { %p3315_p12 = pnand %p3313_p11, %p3310_p10 }
  0x3b   :  { %3318 = shalt.err (!%p3315_p12)
}
  0x3c   :  { %s3319_s13 = scalar_lea.vmem %s47_s18, 64  ;;  %p3324_p0 = scmp.lt.s32.totalorder %s47_s18, %s47_s18 }
  0x3d   :  { %p3320_p13 = scmp.ne.s32.totalorder %s47_s18, %s3319_s13  ;;  %p3325_p1 = scmp.lt.s32.totalorder %s3319_s13, %s3319_s13 }
  0x3f   :  { %p3326_p2 = por %p3325_p1, %p3324_p0 }
  0x41   :  { %p3327_p3 = pnand %p3326_p2, %p3320_p13 }
  0x43   :  { %3330 = shalt.err (!%p3327_p3)
}
  0x44   :  { %49 = dma.hbm_to_vmem [thread:$0]  %s3568_s2, 64, %s47_s18, [#allocation5]  }
  0x45   :  { %s3391_s15 = smov [#allocation9]   ;;  %s3331_s20 = scalar_lea.hbm %s3571_s5, 2048 }
  0x46   :  { %s69_s16 = sshll.u32 %s3391_s15, 4  ;;  %p3332_p4 = scmp.ne.s32.totalorder %s3571_s5, %s3331_s20  ;;  %s70_s16 = int_to_ptr.vmem [resolvable:$true] %s69_s16 }
  0x47   :  { %p3335_p5 = scmp.lt.u32.totalorder %s3331_s20, %s3571_s5 }
  0x49   :  { %p3337_p6 = pnand %p3335_p5, %p3332_p4 }
  0x4b   :  { %3340 = shalt.err (!%p3337_p6)
}
  0x4c   :  { %s3341_s26 = scalar_lea.vmem %s70_s16, 2048  ;;  %p3346_p8 = scmp.lt.s32.totalorder %s70_s16, %s70_s16 }
  0x4d   :  { %p3342_p7 = scmp.ne.s32.totalorder %s70_s16, %s3341_s26  ;;  %p3347_p9 = scmp.lt.s32.totalorder %s3341_s26, %s3341_s26 }
  0x4f   :  { %p3348_p10 = por %p3347_p9, %p3346_p8 }
  0x51   :  { %p3349_p11 = pnand %p3348_p10, %p3342_p7 }
  0x53   :  { %3352 = shalt.err (!%p3349_p11)
}
  0x54   :  { %s3392_s2 = smov 64   ;;  %s3393_s18 = smov 4  }
  0x55   :  { %75 = dma.hbm_to_vmem [thread:$0]  %s3571_s5, 2048, %s70_s16, [#allocation8], %s3392_s2, %s3392_s2, %s3393_s18  }
  0x56   :  { %s3394_s27 = smov [#allocation10]   ;;  %s3353_s11 = scalar_lea.hbm %s3573_s7, 1024 }
  0x57   :  { %s83_s28 = sshll.u32 %s3394_s27, 4  ;;  %p3354_p12 = scmp.ne.s32.totalorder %s3573_s7, %s3353_s11  ;;  %s84_s28 = int_to_ptr.vmem [resolvable:$true] %s83_s28 }
  0x58   :  { %p3357_p13 = scmp.lt.u32.totalorder %s3353_s11, %s3573_s7 }
  0x5a   :  { %p3359_p0 = pnand %p3357_p13, %p3354_p12 }
  0x5c   :  { %3362 = shalt.err (!%p3359_p0)
}
  0x5d   :  { %s3363_s0 = scalar_lea.vmem %s84_s28, 1024  ;;  %p3368_p2 = scmp.lt.s32.totalorder %s84_s28, %s84_s28 }
  0x5e   :  { %p3364_p1 = scmp.ne.s32.totalorder %s84_s28, %s3363_s0  ;;  %p3369_p3 = scmp.lt.s32.totalorder %s3363_s0, %s3363_s0 }
  0x60   :  { %p3370_p4 = por %p3369_p3, %p3368_p2 }
  0x62   :  { %p3371_p5 = pnand %p3370_p4, %p3364_p1 }
  0x64   :  { %3374 = shalt.err (!%p3371_p5)
}
  0x65   :  { %89 = dma.hbm_to_vmem [thread:$0]  %s3573_s7, 1024, %s84_s28, [#allocation11], %s3392_s2, %s3392_s2, %s3393_s18  }
  0x66   :  { %3375 = dma.done.wait [#allocation3], 896  }
  0x67   :  { %3376 = vsyncadd [#allocation3], 4294966400 }
  0x68   :  { %3377 = dma.done.wait [#allocation5], 25152  }
  0x69   :  { %3378 = vsyncadd [#allocation5], 4294942144 }
  0x6a   :  { %3379 = dma.done.wait [#allocation8], 10240  }
  0x6b   :  { %3380 = vsyncadd [#allocation8], 4294957056 }
  0x6c   :  { %3381 = dma.done.wait [#allocation11], 1024  }
  0x6d   :  { %3382 = vsyncadd [#allocation11], 4294966272  ;;  %v3395_v0 = vmov 0   ;;  %v2829_v1 = vld [vmem:[#allocation4 + $0x4] ss:$16 sps:$4 sm:$0xff]   ;;  %v117_v9 = vld [vmem:[#allocation2 + $0x30] sm:$0xff] }
  0x6e   :  { %1482 = vmatprep.mubr.bf16.mxu1 %v3395_v0  ;;  %v2831_v2 = vld [vmem:[#allocation4 + $0x604] ss:$16 sps:$4 sm:$0xff]   ;;  %1327 = vmatprep.subr.bf16.mxu0 %v2829_v1  ;;  %v2833_v3 = vld [vmem:[#allocation4] ss:$16 sps:$4 sm:$0xff]   ;;  %v2837_v6 = vld [vmem:[#allocation4 + $0x8] ss:$16 sps:$4 sm:$0xff]   ;;  %v3521_v10 = vpack.c.bf16 %v117_v9, %v117_v9 }
  0x6f   :  { %v2834_v4 = vld [vmem:[#allocation4 + $0x600] ss:$16 sps:$4 sm:$0xff]   ;;  %1450 = vmatprep.subr.bf16.mxu1 %v2831_v2  ;;  %v2835_v5 = vld [vmem:[#allocation4 + $0x24] ss:$16 sps:$4 sm:$0xff]   ;;  %1328 = vmatpush1.bf16.msra.mxu0 %v2833_v3  ;;  %v2839_v7 = vld [vmem:[#allocation4 + $0xc] ss:$16 sps:$4 sm:$0xff]  }
  0x70   :  { %1451 = vmatpush1.bf16.msra.mxu1 %v2834_v4  ;;  %1329 = vmatprep.subr.bf16.mxu0 %v2835_v5  ;;  %v2840_v8 = vld [vmem:[#allocation4 + $0x20] ss:$16 sps:$4 sm:$0xff]   ;;  %vm1323_vm0 = vcmask 130048   ;;  %v2841_v11 = vld [vmem:[#allocation4 + $0x44] ss:$16 sps:$4 sm:$0xff]   ;;  %vm3397_vm1 = vmmov 0  }
  0x71   :  { %1491 = vmatprep.subr.bf16.mxu1 %v2839_v7  ;;  %v2843_v12 = vld [vmem:[#allocation4 + $0x28] ss:$16 sps:$4 sm:$0xff]   ;;  %v2845_v13 = vld [vmem:[#allocation4 + $0x2c] ss:$16 sps:$4 sm:$0xff]   ;;  %v2846_v14 = vld [vmem:[#allocation4 + $0x40] ss:$16 sps:$4 sm:$0xff]  }
  0x72   :  { %v2847_v15 = vld [vmem:[#allocation4 + $0x64] ss:$16 sps:$4 sm:$0xff]   ;;  %v2851_v16 = vld [vmem:[#allocation4 + $0x4c] ss:$16 sps:$4 sm:$0xff]   ;;  %v2852_v17 = vld [vmem:[#allocation4 + $0x60] ss:$16 sps:$4 sm:$0xff]  }
  0x73   :  { %1330 = vmatpush1.bf16.msra.mxu0 %v2840_v8  ;;  %2639 = vmatmul.mubr.msk.bf16.vlgmr.msra.gmra.mrb[0].mxu1 %vm1323_vm0, %v3521_v10  ;;  %v2849_v18 = vld [vmem:[#allocation4 + $0x48] ss:$16 sps:$4 sm:$0xff]   ;;  %v2853_v19 = vld [vmem:[#allocation4 + $0x84] ss:$16 sps:$4 sm:$0xff]   ;;  %v2857_v20 = vld [vmem:[#allocation4 + $0x6c] ss:$16 sps:$4 sm:$0xff]  }
  0x74   :  { %1492 = vmatpush1.bf16.msra.mxu1 %v2837_v6  ;;  %1331 = vmatprep.subr.bf16.mxu0 %v2841_v11  ;;  %v2855_v21 = vld [vmem:[#allocation4 + $0x68] ss:$16 sps:$4 sm:$0xff]   ;;  %v2858_v22 = vld [vmem:[#allocation4 + $0x80] ss:$16 sps:$4 sm:$0xff]   ;;  %v2859_v23 = vld [vmem:[#allocation4 + $0xa4] ss:$16 sps:$4 sm:$0xff]  }
  0x75   :  { %1493 = vmatprep.subr.bf16.mxu1 %v2845_v13  ;;  %v2863_v24 = vld [vmem:[#allocation4 + $0x8c] ss:$16 sps:$4 sm:$0xff]   ;;  %v2864_v25 = vld [vmem:[#allocation4 + $0xa0] ss:$16 sps:$4 sm:$0xff]   ;;  %v2861_v26 = vld [vmem:[#allocation4 + $0x88] ss:$16 sps:$4 sm:$0xff]  }
  0x76   :  { %v2865_v27 = vld [vmem:[#allocation4 + $0xc4] ss:$16 sps:$4 sm:$0xff]   ;;  %v2869_v28 = vld [vmem:[#allocation4 + $0xac] ss:$16 sps:$4 sm:$0xff]   ;;  %v2867_v29 = vld [vmem:[#allocation4 + $0xa8] ss:$16 sps:$4 sm:$0xff]  }
  0x77   :  { %1332 = vmatpush1.bf16.msra.mxu0 %v2846_v14  ;;  %v2870_v30 = vld [vmem:[#allocation4 + $0xc0] ss:$16 sps:$4 sm:$0xff]   ;;  %v2871_v31 = vld [vmem:[#allocation4 + $0xe4] ss:$16 sps:$4 sm:$0xff]   ;;  %v2875_v32 = vld [vmem:[#allocation4 + $0xcc] ss:$16 sps:$4 sm:$0xff]  }
  0x78   :  { %1494 = vmatpush1.bf16.msra.mxu1 %v2843_v12  ;;  %1333 = vmatprep.subr.bf16.mxu0 %v2847_v15  ;;  %v2876_v33 = vld [vmem:[#allocation4 + $0xe0] ss:$16 sps:$4 sm:$0xff]   ;;  %v2873_v34 = vld [vmem:[#allocation4 + $0xc8] ss:$16 sps:$4 sm:$0xff]   ;;  %v2877_v35 = vld [vmem:[#allocation4 + $0x104] ss:$16 sps:$4 sm:$0xff]  }
  0x79   :  { %1495 = vmatprep.subr.bf16.mxu1 %v2851_v16  ;;  %v2881_v36 = vld [vmem:[#allocation4 + $0xec] ss:$16 sps:$4 sm:$0xff]   ;;  %v2879_v37 = vld [vmem:[#allocation4 + $0xe8] ss:$16 sps:$4 sm:$0xff]   ;;  %v2882_v38 = vld [vmem:[#allocation4 + $0x100] ss:$16 sps:$4 sm:$0xff]  }
  0x7a   :  { %v2883_v39 = vld [vmem:[#allocation4 + $0x124] ss:$16 sps:$4 sm:$0xff]   ;;  %v2887_v40 = vld [vmem:[#allocation4 + $0x10c] ss:$16 sps:$4 sm:$0xff]   ;;  %v2888_v41 = vld [vmem:[#allocation4 + $0x120] ss:$16 sps:$4 sm:$0xff]  }
  0x7b   :  { %1334 = vmatpush1.bf16.msra.mxu0 %v2852_v17  ;;  %v2885_v42 = vld [vmem:[#allocation4 + $0x108] ss:$16 sps:$4 sm:$0xff]   ;;  %v2889_v43 = vld [vmem:[#allocation4 + $0x144] ss:$16 sps:$4 sm:$0xff]   ;;  %v2893_v44 = vld [vmem:[#allocation4 + $0x12c] ss:$16 sps:$4 sm:$0xff]  }
  0x7c   :  { %1496 = vmatpush1.bf16.msra.mxu1 %v2849_v18  ;;  %1335 = vmatprep.subr.bf16.mxu0 %v2853_v19  ;;  %v2891_v45 = vld [vmem:[#allocation4 + $0x128] ss:$16 sps:$4 sm:$0xff]   ;;  %v2894_v46 = vld [vmem:[#allocation4 + $0x140] ss:$16 sps:$4 sm:$0xff]   ;;  %v2895_v47 = vld [vmem:[#allocation4 + $0x164] ss:$16 sps:$4 sm:$0xff]  }
  0x7d   :  { %1497 = vmatprep.subr.bf16.mxu1 %v2857_v20  ;;  %v2899_v48 = vld [vmem:[#allocation4 + $0x14c] ss:$16 sps:$4 sm:$0xff]   ;;  %v112_v49 = vld [vmem:[#allocation2 + $0x8] sm:$0xff]  ;;  %v2897_v52 = vld [vmem:[#allocation4 + $0x148] ss:$16 sps:$4 sm:$0xff]  }
  0x7e   :  { %v2900_v50 = vld [vmem:[#allocation4 + $0x160] ss:$16 sps:$4 sm:$0xff]   ;;  %v119_v51 = vpack.c.bf16 %v112_v49, %v112_v49  ;;  %v2901_v53 = vld [vmem:[#allocation4 + $0x184] ss:$16 sps:$4 sm:$0xff]   ;;  %v2905_v54 = vld [vmem:[#allocation4 + $0x16c] ss:$16 sps:$4 sm:$0xff]  }
  0x7f   :  { %1336 = vmatpush1.bf16.msra.mxu0 %v2858_v22  ;;  %v2903_v55 = vld [vmem:[#allocation4 + $0x168] ss:$16 sps:$4 sm:$0xff]   ;;  %v2906_v56 = vld [vmem:[#allocation4 + $0x180] ss:$16 sps:$4 sm:$0xff]   ;;  %v2907_v57 = vld [vmem:[#allocation4 + $0x1a4] ss:$16 sps:$4 sm:$0xff]  }
  0x80   :  { %1498 = vmatpush1.bf16.msra.mxu1 %v2855_v21  ;;  %1337 = vmatprep.subr.bf16.mxu0 %v2859_v23  ;;  %v2911_v58 = vld [vmem:[#allocation4 + $0x18c] ss:$16 sps:$4 sm:$0xff]   ;;  %v2909_v59 = vld [vmem:[#allocation4 + $0x188] ss:$16 sps:$4 sm:$0xff]   ;;  %v2912_v60 = vld [vmem:[#allocation4 + $0x1a0] ss:$16 sps:$4 sm:$0xff]  }
  0x81   :  { %1499 = vmatprep.subr.bf16.mxu1 %v2863_v24  ;;  %1359 = vmatprep.mubr.bf16.mxu0 %v119_v51  ;;  %v2913_v61 = vld [vmem:[#allocation4 + $0x1c4] ss:$16 sps:$4 sm:$0xff]   ;;  %v2917_v62 = vld [vmem:[#allocation4 + $0x1ac] ss:$16 sps:$4 sm:$0xff]   ;;  %v2915_v63 = vld [vmem:[#allocation4 + $0x1a8] ss:$16 sps:$4 sm:$0xff]  }
  0x82   :  { %1523 = vmatprep.mubr.bf16.mxu1 %v119_v51  ;;  %v2918_v1 = vld [vmem:[#allocation4 + $0x1c0] ss:$16 sps:$4 sm:$0xff]   ;;  %v2919_v2 = vld [vmem:[#allocation4 + $0x1e4] ss:$16 sps:$4 sm:$0xff]   ;;  %v2923_v3 = vld [vmem:[#allocation4 + $0x1cc] ss:$16 sps:$4 sm:$0xff]  }
  0x83   :  { %1338 = vmatpush1.bf16.msra.mxu0 %v2864_v25  ;;  %v2921_v4 = vld [vmem:[#allocation4 + $0x1c8] ss:$16 sps:$4 sm:$0xff]   ;;  %v2924_v5 = vld [vmem:[#allocation4 + $0x1e0] ss:$16 sps:$4 sm:$0xff]   ;;  %v2927_v7 = vld [vmem:[#allocation4 + $0x204] ss:$16 sps:$4 sm:$0xff]  }
  0x84   :  { %1500 = vmatpush1.bf16.msra.mxu1 %v2861_v26  ;;  %1339 = vmatprep.subr.bf16.mxu0 %v2865_v27  ;;  %v111_v6 = vld [vmem:[#allocation2] sm:$0xff]  ;;  %v2925_v11 = vld [vmem:[#allocation4 + $0x200] ss:$16 sps:$4 sm:$0xff]   ;;  %v2933_v13 = vld [vmem:[#allocation4 + $0x224] ss:$16 sps:$4 sm:$0xff]  }
  0x85   :  { %1501 = vmatprep.subr.bf16.mxu1 %v2869_v28  ;;  %v2930_v8 = vld [vmem:[#allocation4 + $0x1ec] ss:$16 sps:$4 sm:$0xff]   ;;  %v118_v9 = vpack.c.bf16 %v111_v6, %v111_v6  ;;  %v2928_v12 = vld [vmem:[#allocation4 + $0x1e8] ss:$16 sps:$4 sm:$0xff]   ;;  %v2931_v15 = vld [vmem:[#allocation4 + $0x220] ss:$16 sps:$4 sm:$0xff]  }
  0x86   :  { %v2936_v14 = vld [vmem:[#allocation4 + $0x20c] ss:$16 sps:$4 sm:$0xff]   ;;  %v2934_v16 = vld [vmem:[#allocation4 + $0x208] ss:$16 sps:$4 sm:$0xff]   ;;  %v2939_v17 = vld [vmem:[#allocation4 + $0x244] ss:$16 sps:$4 sm:$0xff]  }
  0x87   :  { %1340 = vmatpush1.bf16.msra.mxu0 %v2870_v30  ;;  %v2942_v18 = vld [vmem:[#allocation4 + $0x22c] ss:$16 sps:$4 sm:$0xff]   ;;  %v2937_v19 = vld [vmem:[#allocation4 + $0x240] ss:$16 sps:$4 sm:$0xff]   ;;  %v2940_v20 = vld [vmem:[#allocation4 + $0x228] ss:$16 sps:$4 sm:$0xff]  }
  0x88   :  { %1502 = vmatpush1.bf16.msra.mxu1 %v2867_v29  ;;  %1341 = vmatprep.subr.bf16.mxu0 %v2871_v31  ;;  %v2945_v21 = vld [vmem:[#allocation4 + $0x264] ss:$16 sps:$4 sm:$0xff]   ;;  %v2948_v22 = vld [vmem:[#allocation4 + $0x24c] ss:$16 sps:$4 sm:$0xff]   ;;  %v2943_v23 = vld [vmem:[#allocation4 + $0x260] ss:$16 sps:$4 sm:$0xff]  }
  0x89   :  { %1503 = vmatprep.subr.bf16.mxu1 %v2875_v32  ;;  %v2946_v24 = vld [vmem:[#allocation4 + $0x248] ss:$16 sps:$4 sm:$0xff]   ;;  %v2951_v25 = vld [vmem:[#allocation4 + $0x284] ss:$16 sps:$4 sm:$0xff]   ;;  %v2954_v26 = vld [vmem:[#allocation4 + $0x26c] ss:$16 sps:$4 sm:$0xff]  }
  0x8a   :  { %v2949_v27 = vld [vmem:[#allocation4 + $0x280] ss:$16 sps:$4 sm:$0xff]   ;;  %v2952_v28 = vld [vmem:[#allocation4 + $0x268] ss:$16 sps:$4 sm:$0xff]   ;;  %v2957_v29 = vld [vmem:[#allocation4 + $0x2a4] ss:$16 sps:$4 sm:$0xff]  }
  0x8b   :  { %1342 = vmatpush1.bf16.msra.mxu0 %v2876_v33  ;;  %v2960_v30 = vld [vmem:[#allocation4 + $0x28c] ss:$16 sps:$4 sm:$0xff]   ;;  %v2955_v31 = vld [vmem:[#allocation4 + $0x2a0] ss:$16 sps:$4 sm:$0xff]   ;;  %v2958_v32 = vld [vmem:[#allocation4 + $0x288] ss:$16 sps:$4 sm:$0xff]  }
  0x8c   :  { %1504 = vmatpush1.bf16.msra.mxu1 %v2873_v34  ;;  %1343 = vmatprep.subr.bf16.mxu0 %v2877_v35  ;;  %v2963_v33 = vld [vmem:[#allocation4 + $0x2c4] ss:$16 sps:$4 sm:$0xff]   ;;  %v2966_v34 = vld [vmem:[#allocation4 + $0x2ac] ss:$16 sps:$4 sm:$0xff]   ;;  %v2979_v49 = vld [vmem:[#allocation4 + $0x320] ss:$16 sps:$4 sm:$0xff]  }
  0x8d   :  { %1505 = vmatprep.subr.bf16.mxu1 %v2881_v36  ;;  %v114_v35 = vld [vmem:[#allocation2 + $0x18] sm:$0xff] }
  0x8e   :  { %v121_v36 = vpack.c.bf16 %v114_v35, %v114_v35  ;;  %v2987_v51 = vld [vmem:[#allocation4 + $0x344] ss:$16 sps:$4 sm:$0xff]   ;;  %v3009_v6 = vld [vmem:[#allocation4 + $0x3c0] ss:$16 sps:$4 sm:$0xff]  }
  0x8f   :  { %1344 = vmatpush1.bf16.msra.mxu0 %v2882_v38  ;;  %v2964_v38 = vld [vmem:[#allocation4 + $0x2a8] ss:$16 sps:$4 sm:$0xff]   ;;  %v3045_v35 = vld [vmem:[#allocation4 + $0x480] ss:$16 sps:$4 sm:$0xff]  }
  0x90   :  { %1506 = vmatpush1.bf16.msra.mxu1 %v2879_v37  ;;  %1345 = vmatprep.subr.bf16.mxu0 %v2883_v39  ;;  %v2961_v37 = vld [vmem:[#allocation4 + $0x2c0] ss:$16 sps:$4 sm:$0xff]   ;;  %v2969_v39 = vld [vmem:[#allocation4 + $0x2e4] ss:$16 sps:$4 sm:$0xff]  }
  0x91   :  { %1507 = vmatprep.subr.bf16.mxu1 %v2887_v40  ;;  %v2972_v40 = vld [vmem:[#allocation4 + $0x2cc] ss:$16 sps:$4 sm:$0xff]  }
  0x93   :  { %1346 = vmatpush1.bf16.msra.mxu0 %v2888_v41  ;;  %v2967_v41 = vld [vmem:[#allocation4 + $0x2e0] ss:$16 sps:$4 sm:$0xff]  }
  0x94   :  { %1508 = vmatpush1.bf16.msra.mxu1 %v2885_v42  ;;  %1347 = vmatprep.subr.bf16.mxu0 %v2889_v43  ;;  %v2970_v42 = vld [vmem:[#allocation4 + $0x2c8] ss:$16 sps:$4 sm:$0xff]   ;;  %v2975_v43 = vld [vmem:[#allocation4 + $0x304] ss:$16 sps:$4 sm:$0xff]  }
  0x95   :  { %1509 = vmatprep.subr.bf16.mxu1 %v2893_v44  ;;  %v2978_v44 = vld [vmem:[#allocation4 + $0x2ec] ss:$16 sps:$4 sm:$0xff]  }
  0x97   :  { %1348 = vmatpush1.bf16.msra.mxu0 %v2894_v46  ;;  %v2976_v46 = vld [vmem:[#allocation4 + $0x2e8] ss:$16 sps:$4 sm:$0xff]  }
  0x98   :  { %1510 = vmatpush1.bf16.msra.mxu1 %v2891_v45  ;;  %1349 = vmatprep.subr.bf16.mxu0 %v2895_v47  ;;  %v2973_v45 = vld [vmem:[#allocation4 + $0x300] ss:$16 sps:$4 sm:$0xff]   ;;  %v2981_v47 = vld [vmem:[#allocation4 + $0x324] ss:$16 sps:$4 sm:$0xff]  }
  0x99   :  { %1511 = vmatprep.subr.bf16.mxu1 %v2899_v48  ;;  %v2984_v48 = vld [vmem:[#allocation4 + $0x30c] ss:$16 sps:$4 sm:$0xff]  }
  0x9b   :  { %1350 = vmatpush1.bf16.msra.mxu0 %v2900_v50  ;;  %v2982_v50 = vld [vmem:[#allocation4 + $0x308] ss:$16 sps:$4 sm:$0xff]  }
  0x9c   :  { %1512 = vmatpush1.bf16.msra.mxu1 %v2897_v52  ;;  %1351 = vmatprep.subr.bf16.mxu0 %v2901_v53  ;;  %v2990_v52 = vld [vmem:[#allocation4 + $0x32c] ss:$16 sps:$4 sm:$0xff]   ;;  %v2985_v53 = vld [vmem:[#allocation4 + $0x340] ss:$16 sps:$4 sm:$0xff]  }
  0x9d   :  { %1513 = vmatprep.subr.bf16.mxu1 %v2905_v54  ;;  %v2988_v54 = vld [vmem:[#allocation4 + $0x328] ss:$16 sps:$4 sm:$0xff]  }
  0x9f   :  { %1352 = vmatpush1.bf16.msra.mxu0 %v2906_v56  ;;  %v2996_v56 = vld [vmem:[#allocation4 + $0x34c] ss:$16 sps:$4 sm:$0xff]  }
  0xa0   :  { %1514 = vmatpush1.bf16.msra.mxu1 %v2903_v55  ;;  %1353 = vmatprep.subr.bf16.mxu0 %v2907_v57  ;;  %v2993_v55 = vld [vmem:[#allocation4 + $0x364] ss:$16 sps:$4 sm:$0xff]   ;;  %v2991_v57 = vld [vmem:[#allocation4 + $0x360] ss:$16 sps:$4 sm:$0xff]  }
  0xa1   :  { %1515 = vmatprep.subr.bf16.mxu1 %v2911_v58  ;;  %v2994_v58 = vld [vmem:[#allocation4 + $0x348] ss:$16 sps:$4 sm:$0xff]  }
  0xa3   :  { %1354 = vmatpush1.bf16.msra.mxu0 %v2912_v60  ;;  %v3002_v60 = vld [vmem:[#allocation4 + $0x36c] ss:$16 sps:$4 sm:$0xff]  }
  0xa4   :  { %1516 = vmatpush1.bf16.msra.mxu1 %v2909_v59  ;;  %1355 = vmatprep.subr.bf16.mxu0 %v2913_v61  ;;  %v2999_v59 = vld [vmem:[#allocation4 + $0x384] ss:$16 sps:$4 sm:$0xff]   ;;  %v2997_v61 = vld [vmem:[#allocation4 + $0x380] ss:$16 sps:$4 sm:$0xff]  }
  0xa5   :  { %1517 = vmatprep.subr.bf16.mxu1 %v2917_v62  ;;  %v3000_v62 = vld [vmem:[#allocation4 + $0x368] ss:$16 sps:$4 sm:$0xff]  }
  0xa7   :  { %1356 = vmatpush1.bf16.msra.mxu0 %v2918_v1  ;;  %v3008_v1 = vld [vmem:[#allocation4 + $0x38c] ss:$16 sps:$4 sm:$0xff]  }
  0xa8   :  { %1518 = vmatpush1.bf16.msra.mxu1 %v2915_v63  ;;  %1357 = vmatprep.subr.bf16.mxu0 %v2919_v2  ;;  %v3005_v63 = vld [vmem:[#allocation4 + $0x3a4] ss:$16 sps:$4 sm:$0xff]   ;;  %v3003_v2 = vld [vmem:[#allocation4 + $0x3a0] ss:$16 sps:$4 sm:$0xff]  }
  0xa9   :  { %1519 = vmatprep.subr.bf16.mxu1 %v2923_v3  ;;  %v3006_v3 = vld [vmem:[#allocation4 + $0x388] ss:$16 sps:$4 sm:$0xff]  }
  0xab   :  { %1358 = vmatpush1.bf16.msra.mxu0 %v2924_v5  ;;  %v3014_v5 = vld [vmem:[#allocation4 + $0x3ac] ss:$16 sps:$4 sm:$0xff]  }
  0xac   :  { %1520 = vmatpush1.bf16.msra.mxu1 %v2921_v4  ;;  %1368 = vmatprep.subr.bf16.mxu0 %v2927_v7  ;;  %v3011_v4 = vld [vmem:[#allocation4 + $0x3c4] ss:$16 sps:$4 sm:$0xff]   ;;  %v3012_v7 = vld [vmem:[#allocation4 + $0x3a8] ss:$16 sps:$4 sm:$0xff]  }
  0xad   :  { %1521 = vmatprep.subr.bf16.mxu1 %v2930_v8  ;;  %v3017_v8 = vld [vmem:[#allocation4 + $0x3e4] ss:$16 sps:$4 sm:$0xff]  }
  0xae   :  { %1360 = vmatmul.mubr.bf16.vlgmr.msra.gmra.mrb[0].mxu0 %v118_v9 }
  0xaf   :  { %1369 = vmatpush1.bf16.msra.mxu0 %v2925_v11  ;;  %1400 = vmatprep.mubr.bf16.mxu0 %v121_v36  ;;  %v3015_v11 = vld [vmem:[#allocation4 + $0x3e0] ss:$16 sps:$4 sm:$0xff]  }
  0xb0   :  { %1522 = vmatpush1.bf16.msra.mxu1 %v2928_v12  ;;  %1370 = vmatprep.subr.bf16.mxu0 %v2933_v13  ;;  %v113_v12 = vld [vmem:[#allocation2 + $0x10] sm:$0xff] }
  0xb1   :  { %1532 = vmatprep.subr.bf16.mxu1 %v2936_v14  ;;  %v3018_v13 = vld [vmem:[#allocation4 + $0x3c8] ss:$16 sps:$4 sm:$0xff]   ;;  %v3023_v14 = vld [vmem:[#allocation4 + $0x404] ss:$16 sps:$4 sm:$0xff]  }
  0xb3   :  { %1371 = vmatpush1.bf16.msra.mxu0 %v2931_v15  ;;  %1524 = vmatmul.mubr.bf16.vlgmr.msra.gmra.mrb[4].mxu1 %v118_v9  ;;  %v3020_v9 = vld [vmem:[#allocation4 + $0x3cc] ss:$16 sps:$4 sm:$0xff]  }
  0xb4   :  { %1533 = vmatpush1.bf16.msra.mxu1 %v2934_v16  ;;  %1372 = vmatprep.subr.bf16.mxu0 %v2939_v17  ;;  %v3026_v15 = vld [vmem:[#allocation4 + $0x3ec] ss:$16 sps:$4 sm:$0xff]   ;;  %v120_v16 = vpack.c.bf16 %v113_v12, %v113_v12  ;;  %v3021_v17 = vld [vmem:[#allocation4 + $0x400] ss:$16 sps:$4 sm:$0xff]  }
  0xb5   :  { %1534 = vmatprep.subr.bf16.mxu1 %v2942_v18  ;;  %1564 = vmatprep.mubr.bf16.mxu1 %v121_v36  ;;  %v3024_v18 = vld [vmem:[#allocation4 + $0x3e8] ss:$16 sps:$4 sm:$0xff]   ;;  %v3110_v12 = vld [vmem:[#allocation4 + $0x5ac] ss:$16 sps:$4 sm:$0xff]  }
  0xb6   :  { %v3048_v36 = vld [vmem:[#allocation4 + $0x468] ss:$16 sps:$4 sm:$0xff]  }
  0xb7   :  { %1373 = vmatpush1.bf16.msra.mxu0 %v2937_v19  ;;  %v3029_v19 = vld [vmem:[#allocation4 + $0x424] ss:$16 sps:$4 sm:$0xff]  }
  0xb8   :  { %1535 = vmatpush1.bf16.msra.mxu1 %v2940_v20  ;;  %1374 = vmatprep.subr.bf16.mxu0 %v2945_v21  ;;  %v116_v20 = vld [vmem:[#allocation2 + $0x28] sm:$0xff]  ;;  %v3032_v21 = vld [vmem:[#allocation4 + $0x40c] ss:$16 sps:$4 sm:$0xff]  }
  0xb9   :  { %1536 = vmatprep.subr.bf16.mxu1 %v2948_v22  ;;  %v123_v22 = vpack.c.bf16 %v116_v20, %v116_v20  ;;  %v3125_v20 = vld [vmem:[#allocation7 + $0x4] ss:$8 sps:$4 sm:$0xff]  }
  0xbb   :  { %1375 = vmatpush1.bf16.msra.mxu0 %v2943_v23  ;;  %v3027_v23 = vld [vmem:[#allocation4 + $0x420] ss:$16 sps:$4 sm:$0xff]  }
  0xbc   :  { %1537 = vmatpush1.bf16.msra.mxu1 %v2946_v24  ;;  %1376 = vmatprep.subr.bf16.mxu0 %v2951_v25  ;;  %v3030_v24 = vld [vmem:[#allocation4 + $0x408] ss:$16 sps:$4 sm:$0xff]   ;;  %v3035_v25 = vld [vmem:[#allocation4 + $0x444] ss:$16 sps:$4 sm:$0xff]  }
  0xbd   :  { %1538 = vmatprep.subr.bf16.mxu1 %v2954_v26  ;;  %v3038_v26 = vld [vmem:[#allocation4 + $0x42c] ss:$16 sps:$4 sm:$0xff]  }
  0xbf   :  { %1377 = vmatpush1.bf16.msra.mxu0 %v2949_v27  ;;  %v3033_v27 = vld [vmem:[#allocation4 + $0x440] ss:$16 sps:$4 sm:$0xff]  }
  0xc0   :  { %1539 = vmatpush1.bf16.msra.mxu1 %v2952_v28  ;;  %1378 = vmatprep.subr.bf16.mxu0 %v2957_v29  ;;  %v3036_v28 = vld [vmem:[#allocation4 + $0x428] ss:$16 sps:$4 sm:$0xff]   ;;  %v3041_v29 = vld [vmem:[#allocation4 + $0x464] ss:$16 sps:$4 sm:$0xff]  }
  0xc1   :  { %1540 = vmatprep.subr.bf16.mxu1 %v2960_v30  ;;  %v3044_v30 = vld [vmem:[#allocation4 + $0x44c] ss:$16 sps:$4 sm:$0xff]  }
  0xc3   :  { %1379 = vmatpush1.bf16.msra.mxu0 %v2955_v31  ;;  %v3039_v31 = vld [vmem:[#allocation4 + $0x460] ss:$16 sps:$4 sm:$0xff]  }
  0xc4   :  { %1541 = vmatpush1.bf16.msra.mxu1 %v2958_v32  ;;  %1380 = vmatprep.subr.bf16.mxu0 %v2963_v33  ;;  %v3042_v32 = vld [vmem:[#allocation4 + $0x448] ss:$16 sps:$4 sm:$0xff]   ;;  %v3047_v33 = vld [vmem:[#allocation4 + $0x484] ss:$16 sps:$4 sm:$0xff]  }
  0xc5   :  { %1542 = vmatprep.subr.bf16.mxu1 %v2966_v34  ;;  %v3050_v34 = vld [vmem:[#allocation4 + $0x46c] ss:$16 sps:$4 sm:$0xff]  }
  0xc7   :  { %1381 = vmatpush1.bf16.msra.mxu0 %v2961_v37  ;;  %v3053_v37 = vld [vmem:[#allocation4 + $0x4a4] ss:$16 sps:$4 sm:$0xff]  }
  0xc8   :  { %1543 = vmatpush1.bf16.msra.mxu1 %v2964_v38  ;;  %1382 = vmatprep.subr.bf16.mxu0 %v2969_v39  ;;  %v3056_v38 = vld [vmem:[#allocation4 + $0x48c] ss:$16 sps:$4 sm:$0xff]   ;;  %v3051_v39 = vld [vmem:[#allocation4 + $0x4a0] ss:$16 sps:$4 sm:$0xff]  }
  0xc9   :  { %1544 = vmatprep.subr.bf16.mxu1 %v2972_v40  ;;  %v3054_v40 = vld [vmem:[#allocation4 + $0x488] ss:$16 sps:$4 sm:$0xff]  }
  0xcb   :  { %1383 = vmatpush1.bf16.msra.mxu0 %v2967_v41  ;;  %v3059_v41 = vld [vmem:[#allocation4 + $0x4c4] ss:$16 sps:$4 sm:$0xff]  }
  0xcc   :  { %1545 = vmatpush1.bf16.msra.mxu1 %v2970_v42  ;;  %1384 = vmatprep.subr.bf16.mxu0 %v2975_v43  ;;  %v3062_v42 = vld [vmem:[#allocation4 + $0x4ac] ss:$16 sps:$4 sm:$0xff]   ;;  %v3057_v43 = vld [vmem:[#allocation4 + $0x4c0] ss:$16 sps:$4 sm:$0xff]  }
  0xcd   :  { %1546 = vmatprep.subr.bf16.mxu1 %v2978_v44  ;;  %v3060_v44 = vld [vmem:[#allocation4 + $0x4a8] ss:$16 sps:$4 sm:$0xff]  }
  0xcf   :  { %1385 = vmatpush1.bf16.msra.mxu0 %v2973_v45  ;;  %v3065_v45 = vld [vmem:[#allocation4 + $0x4e4] ss:$16 sps:$4 sm:$0xff]  }
  0xd0   :  { %1547 = vmatpush1.bf16.msra.mxu1 %v2976_v46  ;;  %1386 = vmatprep.subr.bf16.mxu0 %v2981_v47  ;;  %v3068_v46 = vld [vmem:[#allocation4 + $0x4cc] ss:$16 sps:$4 sm:$0xff]   ;;  %v3063_v47 = vld [vmem:[#allocation4 + $0x4e0] ss:$16 sps:$4 sm:$0xff]  }
  0xd1   :  { %1548 = vmatprep.subr.bf16.mxu1 %v2984_v48  ;;  %v3066_v48 = vld [vmem:[#allocation4 + $0x4c8] ss:$16 sps:$4 sm:$0xff]  }
  0xd3   :  { %1387 = vmatpush1.bf16.msra.mxu0 %v2979_v49  ;;  %v3071_v49 = vld [vmem:[#allocation4 + $0x504] ss:$16 sps:$4 sm:$0xff]  }
  0xd4   :  { %1549 = vmatpush1.bf16.msra.mxu1 %v2982_v50  ;;  %1388 = vmatprep.subr.bf16.mxu0 %v2987_v51  ;;  %v3074_v50 = vld [vmem:[#allocation4 + $0x4ec] ss:$16 sps:$4 sm:$0xff]   ;;  %v3069_v51 = vld [vmem:[#allocation4 + $0x500] ss:$16 sps:$4 sm:$0xff]  }
  0xd5   :  { %1550 = vmatprep.subr.bf16.mxu1 %v2990_v52  ;;  %v3072_v52 = vld [vmem:[#allocation4 + $0x4e8] ss:$16 sps:$4 sm:$0xff]  }
  0xd7   :  { %1389 = vmatpush1.bf16.msra.mxu0 %v2985_v53  ;;  %v3077_v53 = vld [vmem:[#allocation4 + $0x524] ss:$16 sps:$4 sm:$0xff]  }
  0xd8   :  { %1551 = vmatpush1.bf16.msra.mxu1 %v2988_v54  ;;  %1390 = vmatprep.subr.bf16.mxu0 %v2993_v55  ;;  %v3080_v54 = vld [vmem:[#allocation4 + $0x50c] ss:$16 sps:$4 sm:$0xff]   ;;  %v3075_v55 = vld [vmem:[#allocation4 + $0x520] ss:$16 sps:$4 sm:$0xff]  }
  0xd9   :  { %1552 = vmatprep.subr.bf16.mxu1 %v2996_v56  ;;  %v3078_v56 = vld [vmem:[#allocation4 + $0x508] ss:$16 sps:$4 sm:$0xff]  }
  0xdb   :  { %1391 = vmatpush1.bf16.msra.mxu0 %v2991_v57  ;;  %v3083_v57 = vld [vmem:[#allocation4 + $0x544] ss:$16 sps:$4 sm:$0xff]  }
  0xdc   :  { %1553 = vmatpush1.bf16.msra.mxu1 %v2994_v58  ;;  %1392 = vmatprep.subr.bf16.mxu0 %v2999_v59  ;;  %v3086_v58 = vld [vmem:[#allocation4 + $0x52c] ss:$16 sps:$4 sm:$0xff]   ;;  %v3081_v59 = vld [vmem:[#allocation4 + $0x540] ss:$16 sps:$4 sm:$0xff]  }
  0xdd   :  { %1554 = vmatprep.subr.bf16.mxu1 %v3002_v60  ;;  %v3084_v60 = vld [vmem:[#allocation4 + $0x528] ss:$16 sps:$4 sm:$0xff]  }
  0xdf   :  { %1393 = vmatpush1.bf16.msra.mxu0 %v2997_v61  ;;  %v3089_v61 = vld [vmem:[#allocation4 + $0x564] ss:$16 sps:$4 sm:$0xff]  }
  0xe0   :  { %1555 = vmatpush1.bf16.msra.mxu1 %v3000_v62  ;;  %1394 = vmatprep.subr.bf16.mxu0 %v3005_v63  ;;  %v3092_v62 = vld [vmem:[#allocation4 + $0x54c] ss:$16 sps:$4 sm:$0xff]   ;;  %v3087_v63 = vld [vmem:[#allocation4 + $0x560] ss:$16 sps:$4 sm:$0xff]  }
  0xe1   :  { %1556 = vmatprep.subr.bf16.mxu1 %v3008_v1  ;;  %v3090_v1 = vld [vmem:[#allocation4 + $0x548] ss:$16 sps:$4 sm:$0xff]  }
  0xe3   :  { %1395 = vmatpush1.bf16.msra.mxu0 %v3003_v2  ;;  %v3095_v2 = vld [vmem:[#allocation4 + $0x584] ss:$16 sps:$4 sm:$0xff]  }
  0xe4   :  { %1557 = vmatpush1.bf16.msra.mxu1 %v3006_v3  ;;  %1396 = vmatprep.subr.bf16.mxu0 %v3011_v4  ;;  %v3098_v3 = vld [vmem:[#allocation4 + $0x56c] ss:$16 sps:$4 sm:$0xff]   ;;  %v3093_v4 = vld [vmem:[#allocation4 + $0x580] ss:$16 sps:$4 sm:$0xff]  }
  0xe5   :  { %1558 = vmatprep.subr.bf16.mxu1 %v3014_v5  ;;  %v3096_v5 = vld [vmem:[#allocation4 + $0x568] ss:$16 sps:$4 sm:$0xff]  }
  0xe7   :  { %1397 = vmatpush1.bf16.msra.mxu0 %v3009_v6  ;;  %v3101_v6 = vld [vmem:[#allocation4 + $0x5a4] ss:$16 sps:$4 sm:$0xff]  }
  0xe8   :  { %1559 = vmatpush1.bf16.msra.mxu1 %v3012_v7  ;;  %1398 = vmatprep.subr.bf16.mxu0 %v3017_v8  ;;  %v3104_v7 = vld [vmem:[#allocation4 + $0x58c] ss:$16 sps:$4 sm:$0xff]   ;;  %v3099_v8 = vld [vmem:[#allocation4 + $0x5a0] ss:$16 sps:$4 sm:$0xff]  }
  0xe9   :  { %1560 = vmatprep.subr.bf16.mxu1 %v3020_v9  ;;  %v3102_v9 = vld [vmem:[#allocation4 + $0x588] ss:$16 sps:$4 sm:$0xff]  }
  0xeb   :  { %1399 = vmatpush1.bf16.msra.mxu0 %v3015_v11  ;;  %v3107_v11 = vld [vmem:[#allocation4 + $0x5c4] ss:$16 sps:$4 sm:$0xff]  }
  0xec   :  { %1561 = vmatpush1.bf16.msra.mxu1 %v3018_v13  ;;  %1409 = vmatprep.subr.bf16.mxu0 %v3023_v14  ;;  %v3105_v13 = vld [vmem:[#allocation4 + $0x5c0] ss:$16 sps:$4 sm:$0xff]   ;;  %v3108_v14 = vld [vmem:[#allocation4 + $0x5a8] ss:$16 sps:$4 sm:$0xff]  }
  0xed   :  { %1562 = vmatprep.subr.bf16.mxu1 %v3026_v15  ;;  %v3113_v15 = vld [vmem:[#allocation4 + $0x5e4] ss:$16 sps:$4 sm:$0xff]  }
  0xee   :  { %1401 = vmatmul.mubr.bf16.vlgmr.msra.gmra.mrb[0].mxu0 %v120_v16 }
  0xef   :  { %1410 = vmatpush1.bf16.msra.mxu0 %v3021_v17  ;;  %1441 = vmatprep.mubr.bf16.mxu0 %v123_v22  ;;  %v3111_v17 = vld [vmem:[#allocation4 + $0x5e0] ss:$16 sps:$4 sm:$0xff]  }
  0xf0   :  { %1563 = vmatpush1.bf16.msra.mxu1 %v3024_v18  ;;  %1411 = vmatprep.subr.bf16.mxu0 %v3029_v19  ;;  %v115_v18 = vld [vmem:[#allocation2 + $0x20] sm:$0xff] }
  0xf1   :  { %1573 = vmatprep.subr.bf16.mxu1 %v3032_v21  ;;  %v3114_v19 = vld [vmem:[#allocation4 + $0x5c8] ss:$16 sps:$4 sm:$0xff]   ;;  %v3119_v21 = vld [vmem:[#allocation4 + $0x5ec] ss:$16 sps:$4 sm:$0xff]  }
  0xf3   :  { %1412 = vmatpush1.bf16.msra.mxu0 %v3027_v23  ;;  %1565 = vmatmul.mubr.bf16.vlgmr.msra.gmra.mrb[4].mxu1 %v120_v16  ;;  %v3116_v16 = vld [vmem:[#allocation4 + $0x5cc] ss:$16 sps:$4 sm:$0xff]  }
  0xf4   :  { %1574 = vmatpush1.bf16.msra.mxu1 %v3030_v24  ;;  %1413 = vmatprep.subr.bf16.mxu0 %v3035_v25  ;;  %v3123_v23 = vld [vmem:[#allocation7] ss:$8 sps:$4 sm:$0xff]   ;;  %v3117_v24 = vld [vmem:[#allocation4 + $0x5e8] ss:$16 sps:$4 sm:$0xff]  }
  0xf5   :  { %1575 = vmatprep.subr.bf16.mxu1 %v3038_v26  ;;  %1605 = vmatprep.mubr.bf16.mxu1 %v123_v22  ;;  %v122_v22 = vpack.c.bf16 %v115_v18, %v115_v18  ;;  %v3128_v25 = vld [vmem:[#allocation7 + $0x14] ss:$8 sps:$4 sm:$0xff]   ;;  %v3122_v26 = vld [vmem:[#allocation4 + $0x60c] ss:$16 sps:$4 sm:$0xff]  }
  0xf7   :  { %1414 = vmatpush1.bf16.msra.mxu0 %v3033_v27  ;;  %v3126_v27 = vld [vmem:[#allocation7 + $0x10] ss:$8 sps:$4 sm:$0xff]  }
  0xf8   :  { %1576 = vmatpush1.bf16.msra.mxu1 %v3036_v28  ;;  %1415 = vmatprep.subr.bf16.mxu0 %v3041_v29  ;;  %v3120_v28 = vld [vmem:[#allocation4 + $0x608] ss:$16 sps:$4 sm:$0xff]  }
  0xf9   :  { %1577 = vmatprep.subr.bf16.mxu1 %v3044_v30  ;;  %v3131_v29 = vld [vmem:[#allocation7 + $0x24] ss:$8 sps:$4 sm:$0xff]   ;;  %v3129_v30 = vld [vmem:[#allocation7 + $0x20] ss:$8 sps:$4 sm:$0xff]  }
  0xfb   :  { %1416 = vmatpush1.bf16.msra.mxu0 %v3039_v31  ;;  %v3134_v31 = vld [vmem:[#allocation7 + $0x34] ss:$8 sps:$4 sm:$0xff]  }
  0xfc   :  { %1578 = vmatpush1.bf16.msra.mxu1 %v3042_v32  ;;  %1417 = vmatprep.subr.bf16.mxu0 %v3047_v33  ;;  %v3132_v32 = vld [vmem:[#allocation7 + $0x30] ss:$8 sps:$4 sm:$0xff]   ;;  %v3137_v33 = vld [vmem:[#allocation7 + $0x44] ss:$8 sps:$4 sm:$0xff]  }
  0xfd   :  { %1579 = vmatprep.subr.bf16.mxu1 %v3050_v34  ;;  %v3135_v34 = vld [vmem:[#allocation7 + $0x40] ss:$8 sps:$4 sm:$0xff]  }
  0xff   :  { %1418 = vmatpush1.bf16.msra.mxu0 %v3045_v35  ;;  %v3140_v35 = vld [vmem:[#allocation7 + $0x54] ss:$8 sps:$4 sm:$0xff]  }
 0x100   :  { %1580 = vmatpush1.bf16.msra.mxu1 %v3048_v36  ;;  %1419 = vmatprep.subr.bf16.mxu0 %v3053_v37  ;;  %v3138_v36 = vld [vmem:[#allocation7 + $0x50] ss:$8 sps:$4 sm:$0xff]   ;;  %v3143_v37 = vld [vmem:[#allocation7 + $0x64] ss:$8 sps:$4 sm:$0xff]  }
 0x101   :  { %1581 = vmatprep.subr.bf16.mxu1 %v3056_v38  ;;  %v3141_v38 = vld [vmem:[#allocation7 + $0x60] ss:$8 sps:$4 sm:$0xff]  }
 0x103   :  { %1420 = vmatpush1.bf16.msra.mxu0 %v3051_v39 }
 0x104   :  { %1582 = vmatpush1.bf16.msra.mxu1 %v3054_v40  ;;  %1421 = vmatprep.subr.bf16.mxu0 %v3059_v41  ;;  %v3144_v41 = vld [vmem:[#allocation7 + $0x70] ss:$8 sps:$4 sm:$0xff]  }
 0x105   :  { %1583 = vmatprep.subr.bf16.mxu1 %v3062_v42 }
 0x107   :  { %1422 = vmatpush1.bf16.msra.mxu0 %v3057_v43  ;;  %v3149_v43 = vld [vmem:[#allocation7 + $0x84] ss:$8 sps:$4 sm:$0xff]  }
 0x108   :  { %1584 = vmatpush1.bf16.msra.mxu1 %v3060_v44  ;;  %1423 = vmatprep.subr.bf16.mxu0 %v3065_v45  ;;  %v3152_v45 = vld [vmem:[#allocation7 + $0x94] ss:$8 sps:$4 sm:$0xff]  }
 0x109   :  { %1585 = vmatprep.subr.bf16.mxu1 %v3068_v46  ;;  %v3150_v46 = vld [vmem:[#allocation7 + $0x90] ss:$8 sps:$4 sm:$0xff]  }
 0x10b   :  { %1424 = vmatpush1.bf16.msra.mxu0 %v3063_v47  ;;  %v3155_v47 = vld [vmem:[#allocation7 + $0xa4] ss:$8 sps:$4 sm:$0xff]  }
 0x10c   :  { %1586 = vmatpush1.bf16.msra.mxu1 %v3066_v48  ;;  %1425 = vmatprep.subr.bf16.mxu0 %v3071_v49  ;;  %v3153_v48 = vld [vmem:[#allocation7 + $0xa0] ss:$8 sps:$4 sm:$0xff]   ;;  %v3158_v49 = vld [vmem:[#allocation7 + $0xb4] ss:$8 sps:$4 sm:$0xff]  }
 0x10d   :  { %1587 = vmatprep.subr.bf16.mxu1 %v3074_v50  ;;  %v3156_v50 = vld [vmem:[#allocation7 + $0xb0] ss:$8 sps:$4 sm:$0xff]  }
 0x10f   :  { %1426 = vmatpush1.bf16.msra.mxu0 %v3069_v51  ;;  %v3161_v51 = vld [vmem:[#allocation7 + $0xc4] ss:$8 sps:$4 sm:$0xff]  }
 0x110   :  { %1588 = vmatpush1.bf16.msra.mxu1 %v3072_v52  ;;  %1427 = vmatprep.subr.bf16.mxu0 %v3077_v53  ;;  %v3159_v52 = vld [vmem:[#allocation7 + $0xc0] ss:$8 sps:$4 sm:$0xff]   ;;  %v3164_v53 = vld [vmem:[#allocation7 + $0xd4] ss:$8 sps:$4 sm:$0xff]  }
 0x111   :  { %1589 = vmatprep.subr.bf16.mxu1 %v3080_v54  ;;  %v3162_v54 = vld [vmem:[#allocation7 + $0xd0] ss:$8 sps:$4 sm:$0xff]  }
 0x113   :  { %1428 = vmatpush1.bf16.msra.mxu0 %v3075_v55  ;;  %v3167_v55 = vld [vmem:[#allocation7 + $0xe4] ss:$8 sps:$4 sm:$0xff]  }
 0x114   :  { %1590 = vmatpush1.bf16.msra.mxu1 %v3078_v56  ;;  %1429 = vmatprep.subr.bf16.mxu0 %v3083_v57  ;;  %v3165_v56 = vld [vmem:[#allocation7 + $0xe0] ss:$8 sps:$4 sm:$0xff]   ;;  %v3170_v57 = vld [vmem:[#allocation7 + $0xf4] ss:$8 sps:$4 sm:$0xff]  }
 0x115   :  { %1591 = vmatprep.subr.bf16.mxu1 %v3086_v58  ;;  %v3168_v58 = vld [vmem:[#allocation7 + $0xf0] ss:$8 sps:$4 sm:$0xff]  }
 0x117   :  { %1430 = vmatpush1.bf16.msra.mxu0 %v3081_v59  ;;  %v3173_v59 = vld [vmem:[#allocation7 + $0x104] ss:$8 sps:$4 sm:$0xff]  }
 0x118   :  { %1592 = vmatpush1.bf16.msra.mxu1 %v3084_v60  ;;  %1431 = vmatprep.subr.bf16.mxu0 %v3089_v61  ;;  %v3219_v60 = vld [vmem:[#allocation9 + $0x40] sm:$0xff]  }
 0x119   :  { %1593 = vmatprep.subr.bf16.mxu1 %v3092_v62  ;;  %v3220_v61 = vld [vmem:[#allocation9] sm:$0xff]   ;;  %v3221_v62 = vld [vmem:[#allocation9 + $0x48] sm:$0xff]  }
 0x11b   :  { %1432 = vmatpush1.bf16.msra.mxu0 %v3087_v63  ;;  %v3222_v63 = vld [vmem:[#allocation9 + $0x8] sm:$0xff]  }
 0x11c   :  { %1594 = vmatpush1.bf16.msra.mxu1 %v3090_v1  ;;  %1433 = vmatprep.subr.bf16.mxu0 %v3095_v2  ;;  %v3223_v1 = vld [vmem:[#allocation9 + $0x50] sm:$0xff]  }
 0x11d   :  { %1595 = vmatprep.subr.bf16.mxu1 %v3098_v3  ;;  %v3224_v2 = vld [vmem:[#allocation9 + $0x10] sm:$0xff]   ;;  %v3225_v3 = vld [vmem:[#allocation9 + $0x58] sm:$0xff]  }
 0x11f   :  { %1434 = vmatpush1.bf16.msra.mxu0 %v3093_v4  ;;  %v3226_v4 = vld [vmem:[#allocation9 + $0x18] sm:$0xff]  }
 0x120   :  { %1596 = vmatpush1.bf16.msra.mxu1 %v3096_v5  ;;  %1435 = vmatprep.subr.bf16.mxu0 %v3101_v6  ;;  %v3227_v5 = vld [vmem:[#allocation9 + $0x60] sm:$0xff]  }
 0x121   :  { %1597 = vmatprep.subr.bf16.mxu1 %v3104_v7  ;;  %v3228_v6 = vld [vmem:[#allocation9 + $0x20] sm:$0xff]   ;;  %v3229_v7 = vld [vmem:[#allocation9 + $0x68] sm:$0xff]  }
 0x123   :  { %1436 = vmatpush1.bf16.msra.mxu0 %v3099_v8  ;;  %v3230_v8 = vld [vmem:[#allocation9 + $0x28] sm:$0xff]  }
 0x124   :  { %1598 = vmatpush1.bf16.msra.mxu1 %v3102_v9  ;;  %1437 = vmatprep.subr.bf16.mxu0 %v3107_v11  ;;  %v323_v9 = vlaneseq }
 0x125   :  { %1599 = vmatprep.subr.bf16.mxu1 %v3110_v12 }
 0x126   :  { %v3532_v11 = vshrl.u32 %v323_v9, 7  ;;  %v3231_v9 = vld [vmem:[#allocation9 + $0x70] sm:$0xff]  }
 0x127   :  { %1438 = vmatpush1.bf16.msra.mxu0 %v3105_v13  ;;  %v3535_v13 = vld [vmem:[#allocation6] sm:$0xf] }
 0x128   :  { %1600 = vmatpush1.bf16.msra.mxu1 %v3108_v14  ;;  %1439 = vmatprep.subr.bf16.mxu0 %v3113_v15  ;;  %v325_v12 = vsub.s32 0, %v3532_v11  ;;  %v329_v14 = vsub.s32 1, %v3532_v11 }
 0x129   :  { %1601 = vmatprep.subr.bf16.mxu1 %v3116_v16 }
 0x12a   :  { %v326_v15 = vrot.slane %v3535_v13, %v325_v12  ;;  %v330_v16 = vrot.slane %v3535_v13, %v329_v14 }
 0x12b   :  { %1440 = vmatpush1.bf16.msra.mxu0 %v3111_v17 }
 0x12c   :  { %1602 = vmatpush1.bf16.msra.mxu1 %v3114_v19  ;;  %2059 = vmatprep.subr.bf16.mxu0 %v3125_v20 }
 0x12d   :  { %1603 = vmatprep.subr.bf16.mxu1 %v3119_v21 }
 0x12e   :  { %1442 = vmatmul.mubr.bf16.vlgmr.msra.gmra.mrb[0].mxu0 %v122_v22 }
 0x12f   :  { %2060 = vmatpush1.bf16.msra.mxu0 %v3123_v23 }
 0x130   :  { %1604 = vmatpush1.bf16.msra.mxu1 %v3117_v24  ;;  %2061 = vmatprep.subr.bf16.mxu0 %v3128_v25 }
 0x131   :  { %1614 = vmatprep.subr.bf16.mxu1 %v3122_v26 }
 0x133   :  { %1606 = vmatmul.mubr.bf16.vlgmr.msra.gmra.mrb[4].mxu1 %v122_v22  ;;  %2062 = vmatpush1.bf16.msra.mxu0 %v3126_v27 }
 0x134   :  { %1615 = vmatpush1.bf16.msra.mxu1 %v3120_v28  ;;  %1646 = vmatprep.mubr.bf16.mxu1 %v3395_v0  ;;  %v3146_v0 = vld [vmem:[#allocation7 + $0x74] ss:$8 sps:$4 sm:$0xff]   ;;  %v3171_v28 = vld [vmem:[#allocation7 + $0x100] ss:$8 sps:$4 sm:$0xff]  }
 0x135   :  { %2063 = vmatprep.subr.bf16.mxu0 %v3131_v29  ;;  %2731 = vmatprep.subr.bf16.mxu1 %v3219_v60  ;;  %v3207_v60 = vld [vmem:[#allocation7 + $0x1c0] ss:$8 sps:$4 sm:$0xff]  }
 0x137   :  { %2064 = vmatpush1.bf16.msra.mxu0 %v3129_v30  ;;  %v3176_v30 = vld [vmem:[#allocation7 + $0x114] ss:$8 sps:$4 sm:$0xff]  }
 0x138   :  { %2065 = vmatprep.subr.bf16.mxu0 %v3134_v31  ;;  %v337_v31 = vsub.s32 3, %v3532_v11 }
 0x13b   :  { %2066 = vmatpush1.bf16.msra.mxu0 %v3132_v32  ;;  %v3174_v32 = vld [vmem:[#allocation7 + $0x110] ss:$8 sps:$4 sm:$0xff]  }
 0x13c   :  { %2067 = vmatprep.subr.bf16.mxu0 %v3137_v33  ;;  %v3179_v33 = vld [vmem:[#allocation7 + $0x124] ss:$8 sps:$4 sm:$0xff]  }
 0x13f   :  { %2640 = vmatmul.mubr.msk.bf16.vlgmr.msra.gmra.mrb[4].mxu1 %vm1323_vm0, %v3521_v10  ;;  %2068 = vmatpush1.bf16.msra.mxu0 %v3135_v34  ;;  %v3147_v10 = vld [vmem:[#allocation7 + $0x80] ss:$8 sps:$4 sm:$0xff]   ;;  %v338_v34 = vrot.slane %v3535_v13, %v337_v31 }
 0x140   :  { %2069 = vmatprep.subr.bf16.mxu0 %v3140_v35  ;;  %2732 = vmatpush3.bf16.msra.mxu1 %v3220_v61  ;;  %v3177_v35 = vld [vmem:[#allocation7 + $0x120] ss:$8 sps:$4 sm:$0xff]   ;;  %v333_v61 = vsub.s32 2, %v3532_v11  ;;  %v3238_v11 = vld [vmem:[#allocation10 + $0x18] sm:$0xff]  }
 0x141   :  { %2733 = vmatprep.subr.bf16.mxu1 %v3221_v62  ;;  %v3212_v62 = vld [vmem:[#allocation7 + $0x1d4] ss:$8 sps:$4 sm:$0xff]  }
 0x143   :  { %2070 = vmatpush1.bf16.msra.mxu0 %v3138_v36 }
 0x144   :  { %2071 = vmatprep.subr.bf16.mxu0 %v3143_v37  ;;  %2734 = vmatpush3.bf16.msra.mxu1 %v3222_v63  ;;  %v3182_v37 = vld [vmem:[#allocation7 + $0x134] ss:$8 sps:$4 sm:$0xff]   ;;  %v3210_v63 = vld [vmem:[#allocation7 + $0x1d0] ss:$8 sps:$4 sm:$0xff]  }
 0x145   :  { %2735 = vmatprep.subr.bf16.mxu1 %v3223_v1  ;;  %v334_v1 = vrot.slane %v3535_v13, %v333_v61  ;;  %v3234_v13 = vld [vmem:[#allocation9 + $0x38] sm:$0xff]  }
 0x146   :  { %v3528_v39 = vpop.f32.mrb[0].mxu1 }
 0x147   :  { %v3530_v40 = vpop.f32.mrb[1].mxu1  ;;  %2072 = vmatpush1.bf16.msra.mxu0 %v3141_v38 }
 0x148   :  { %v1488_v42 = vpop.f32.mrb[2].mxu1  ;;  %2073 = vmatprep.subr.bf16.mxu0 %v3146_v0  ;;  %2736 = vmatpush3.bf16.msra.mxu1 %v3224_v2  ;;  %v3215_v2 = vld [vmem:[#allocation7 + $0x1e4] ss:$8 sps:$4 sm:$0xff]  }
 0x149   :  { %v1489_v44 = vpop.f32.mrb[3].mxu1  ;;  %2737 = vmatprep.subr.bf16.mxu1 %v3225_v3  ;;  %v3213_v3 = vld [vmem:[#allocation7 + $0x1e0] ss:$8 sps:$4 sm:$0xff]  }
 0x14b   :  { %2074 = vmatpush1.bf16.msra.mxu0 %v3144_v41  ;;  %v3180_v41 = vld [vmem:[#allocation7 + $0x130] ss:$8 sps:$4 sm:$0xff]  }
 0x14c   :  { %2075 = vmatprep.subr.bf16.mxu0 %v3149_v43  ;;  %2738 = vmatpush3.bf16.msra.mxu1 %v3226_v4  ;;  %v3185_v43 = vld [vmem:[#allocation7 + $0x144] ss:$8 sps:$4 sm:$0xff]  }
 0x14d   :  { %2739 = vmatprep.subr.bf16.mxu1 %v3227_v5  ;;  %v3218_v5 = vld [vmem:[#allocation7 + $0x1f4] ss:$8 sps:$4 sm:$0xff]  }
 0x14f   :  { %2076 = vmatpush1.bf16.msra.mxu0 %v3147_v10  ;;  %v3183_v10 = vld [vmem:[#allocation7 + $0x140] ss:$8 sps:$4 sm:$0xff]  }
 0x150   :  { %2077 = vmatprep.subr.bf16.mxu0 %v3152_v45  ;;  %2740 = vmatpush3.bf16.msra.mxu1 %v3228_v6  ;;  %v3188_v45 = vld [vmem:[#allocation7 + $0x154] ss:$8 sps:$4 sm:$0xff]   ;;  %v3216_v6 = vld [vmem:[#allocation7 + $0x1f0] ss:$8 sps:$4 sm:$0xff]  }
 0x151   :  { %2741 = vmatprep.subr.bf16.mxu1 %v3229_v7 }
 0x153   :  { %2078 = vmatpush1.bf16.msra.mxu0 %v3150_v46  ;;  %v3186_v46 = vld [vmem:[#allocation7 + $0x150] ss:$8 sps:$4 sm:$0xff]  }
 0x154   :  { %2079 = vmatprep.subr.bf16.mxu0 %v3155_v47  ;;  %2742 = vmatpush3.bf16.msra.mxu1 %v3230_v8  ;;  %v3191_v47 = vld [vmem:[#allocation7 + $0x164] ss:$8 sps:$4 sm:$0xff]  }
 0x155   :  { %2743 = vmatprep.subr.bf16.mxu1 %v3231_v9 }
 0x157   :  { %2080 = vmatpush1.bf16.msra.mxu0 %v3153_v48  ;;  %v3189_v48 = vld [vmem:[#allocation7 + $0x160] ss:$8 sps:$4 sm:$0xff]  }
 0x158   :  { %2081 = vmatprep.subr.bf16.mxu0 %v3158_v49  ;;  %v3194_v49 = vld [vmem:[#allocation7 + $0x174] ss:$8 sps:$4 sm:$0xff]  }
 0x15b   :  { %2082 = vmatpush1.bf16.msra.mxu0 %v3156_v50  ;;  %v3192_v50 = vld [vmem:[#allocation7 + $0x170] ss:$8 sps:$4 sm:$0xff]  }
 0x15c   :  { %2083 = vmatprep.subr.bf16.mxu0 %v3161_v51  ;;  %v3197_v51 = vld [vmem:[#allocation7 + $0x184] ss:$8 sps:$4 sm:$0xff]  }
 0x15f   :  { %2084 = vmatpush1.bf16.msra.mxu0 %v3159_v52  ;;  %v3195_v52 = vld [vmem:[#allocation7 + $0x180] ss:$8 sps:$4 sm:$0xff]  }
 0x160   :  { %2085 = vmatprep.subr.bf16.mxu0 %v3164_v53  ;;  %v3200_v53 = vld [vmem:[#allocation7 + $0x194] ss:$8 sps:$4 sm:$0xff]  }
 0x163   :  { %2086 = vmatpush1.bf16.msra.mxu0 %v3162_v54  ;;  %v3198_v54 = vld [vmem:[#allocation7 + $0x190] ss:$8 sps:$4 sm:$0xff]  }
 0x164   :  { %2087 = vmatprep.subr.bf16.mxu0 %v3167_v55  ;;  %v3203_v55 = vld [vmem:[#allocation7 + $0x1a4] ss:$8 sps:$4 sm:$0xff]  }
 0x167   :  { %2088 = vmatpush1.bf16.msra.mxu0 %v3165_v56  ;;  %v3201_v56 = vld [vmem:[#allocation7 + $0x1a0] ss:$8 sps:$4 sm:$0xff]  }
 0x168   :  { %2089 = vmatprep.subr.bf16.mxu0 %v3170_v57  ;;  %v3206_v57 = vld [vmem:[#allocation7 + $0x1b4] ss:$8 sps:$4 sm:$0xff]  }
 0x16b   :  { %2090 = vmatpush1.bf16.msra.mxu0 %v3168_v58  ;;  %v3204_v58 = vld [vmem:[#allocation7 + $0x1b0] ss:$8 sps:$4 sm:$0xff]  }
 0x16c   :  { %2100 = vmatprep.subr.bf16.mxu0 %v3173_v59  ;;  %v3209_v59 = vld [vmem:[#allocation7 + $0x1c4] ss:$8 sps:$4 sm:$0xff]  }
 0x201   :  { %v1443_v17 = vpop.f32.mrb[0].mxu0 }
 0x202   :  { %v2782_v18 = vadd.f32 %v1443_v17, %v326_v15  ;;  %v1445_v19 = vpop.f32.mrb[1].mxu0  ;;  %v3232_v15 = vld [vmem:[#allocation9 + $0x30] sm:$0xff]   ;;  %v3396_v17 = vmov 0.0  }
 0x203   :  { %v2784_v20 = vadd.f32 %v1445_v19, %v330_v16  ;;  %v1447_v21 = vpop.f32.mrb[2].mxu0  ;;  %2744 = vmatpush3.bf16.msra.mxu1 %v3232_v15  ;;  %v3233_v16 = vld [vmem:[#allocation9 + $0x78] sm:$0xff]  }
 0x204   :  { %v2783_v22 = vadd.f32 %v2782_v18, %v3528_v39  ;;  %v1448_v23 = vpop.f32.mrb[3].mxu0  ;;  %2745 = vmatprep.subr.bf16.mxu1 %v3233_v16  ;;  %v1727_v18 = vld [vmem:[%s3570_s4] sm:$0x3] }
 0x205   :  { %v2785_v24 = vadd.f32 %v2784_v20, %v3530_v40  ;;  %v1732_v19 = vrot.slane %v1727_v18, %v325_v12  ;;  %v1736_v20 = vrot.slane %v1727_v18, %v329_v14  ;;  %v3237_v12 = vld [vmem:[#allocation10 + $0x10] sm:$0xff]   ;;  %v3239_v14 = vld [vmem:[#allocation10 + $0x20] sm:$0xff]  }
 0x206   :  { %v1655_v25 = vmax.f32 %v2783_v22, 0.0 }
 0x207   :  { %v1656_v26 = vmax.f32 %v2785_v24, 0.0  ;;  %2746 = vmatpush3.bf16.msra.mxu1 %v3234_v13 }
 0x208   :  { %v1659_v29 = vpack.c.bf16 %v1655_v25, %v1655_v25  ;;  %2762 = vmatprep.subr.bf16.mxu1 %v3396_v17 }
 0x209   :  { %v1660_v27 = vpack.c.bf16 %v1656_v26, %v1656_v26 }
 0x20b   :  { %2091 = vmatprep.mubr.bf16.mxu0 %v1660_v27 }
 0x20c   :  { %2092 = vmatmul.mubr.bf16.vlgmr.msra.gmra.mrb[4].mxu0 %v1659_v29 }
 0x20d   :  { %2101 = vmatpush1.bf16.msra.mxu0 %v3171_v28 }
 0x20e   :  { %2102 = vmatprep.subr.bf16.mxu0 %v3176_v30  ;;  %v3235_v30 = vld [vmem:[#allocation10] sm:$0xff]  }
 0x211   :  { %2103 = vmatpush1.bf16.msra.mxu0 %v3174_v32  ;;  %v3236_v32 = vld [vmem:[#allocation10 + $0x8] sm:$0xff]  }
 0x212   :  { %v1648_v36 = vpop.f32.mrb[4].mxu1  ;;  %2104 = vmatprep.subr.bf16.mxu0 %v3179_v33  ;;  %v3240_v33 = vld [vmem:[#allocation10 + $0x28] sm:$0xff]  }
 0x213   :  { %v1650_v38 = vpop.f32.mrb[5].mxu1  ;;  %v2786_v4 = vadd.f32 %v1648_v36, %v334_v1 }
 0x214   :  { %v2787_v0 = vadd.f32 %v1650_v38, %v338_v34  ;;  %v1652_v39 = vpop.f32.mrb[6].mxu1  ;;  %v3241_v34 = vld [vmem:[#allocation10 + $0x30] sm:$0xff]  }
 0x215   :  { %v1653_v40 = vpop.f32.mrb[7].mxu1  ;;  %2105 = vmatpush1.bf16.msra.mxu0 %v3177_v35  ;;  %v1657_v7 = vmax.f32 %v2786_v4, 0.0  ;;  %v3242_v35 = vld [vmem:[#allocation10 + $0x38] sm:$0xff]  }
 0x216   :  { %v1658_v42 = vmax.f32 %v2787_v0, 0.0  ;;  %2106 = vmatprep.subr.bf16.mxu0 %v3182_v37  ;;  %v2705_v37 = vld [vmem:[%s3572_s6] ss:$0 sm:$0xff] }
 0x217   :  { %v1661_v8 = vpack.c.bf16 %v1657_v7, %v1657_v7 }
 0x218   :  { %v1662_v44 = vpack.c.bf16 %v1658_v42, %v1658_v42 }
 0x219   :  { %2107 = vmatpush1.bf16.msra.mxu0 %v3180_v41 }
 0x21a   :  { %2132 = vmatprep.mubr.bf16.mxu0 %v1662_v44  ;;  %2108 = vmatprep.subr.bf16.mxu0 %v3185_v43  ;;  %v2722_v44 = vld [vmem:[%s3574_s8] ss:$0 sm:$0xff] }
 0x21d   :  { %2109 = vmatpush1.bf16.msra.mxu0 %v3183_v10 }
 0x21e   :  { %2110 = vmatprep.subr.bf16.mxu0 %v3188_v45 }
 0x221   :  { %2111 = vmatpush1.bf16.msra.mxu0 %v3186_v46 }
 0x222   :  { %2112 = vmatprep.subr.bf16.mxu0 %v3191_v47 }
 0x225   :  { %2113 = vmatpush1.bf16.msra.mxu0 %v3189_v48 }
 0x226   :  { %2114 = vmatprep.subr.bf16.mxu0 %v3194_v49 }
 0x229   :  { %2115 = vmatpush1.bf16.msra.mxu0 %v3192_v50 }
 0x22a   :  { %2116 = vmatprep.subr.bf16.mxu0 %v3197_v51 }
 0x22d   :  { %2117 = vmatpush1.bf16.msra.mxu0 %v3195_v52 }
 0x22e   :  { %2118 = vmatprep.subr.bf16.mxu0 %v3200_v53 }
 0x231   :  { %2119 = vmatpush1.bf16.msra.mxu0 %v3198_v54 }
 0x232   :  { %2120 = vmatprep.subr.bf16.mxu0 %v3203_v55 }
 0x235   :  { %2121 = vmatpush1.bf16.msra.mxu0 %v3201_v56 }
 0x236   :  { %2122 = vmatprep.subr.bf16.mxu0 %v3206_v57 }
 0x239   :  { %2123 = vmatpush1.bf16.msra.mxu0 %v3204_v58 }
 0x23a   :  { %2124 = vmatprep.subr.bf16.mxu0 %v3209_v59 }
 0x23d   :  { %2125 = vmatpush1.bf16.msra.mxu0 %v3207_v60 }
 0x23e   :  { %2126 = vmatprep.subr.bf16.mxu0 %v3212_v62 }
 0x241   :  { %2127 = vmatpush1.bf16.msra.mxu0 %v3210_v63 }
 0x242   :  { %2128 = vmatprep.subr.bf16.mxu0 %v3215_v2 }
 0x245   :  { %2129 = vmatpush1.bf16.msra.mxu0 %v3213_v3 }
 0x246   :  { %2130 = vmatprep.subr.bf16.mxu0 %v3218_v5 }
 0x249   :  { %2131 = vmatpush1.bf16.msra.mxu0 %v3216_v6 }
 0x24c   :  { %2133 = vmatmul.mubr.bf16.vlgmr.msra.gmra.mrb[4].mxu0 %v1661_v8 }
 0x31f   :  { %v2134_v21 = vpop.f32.mrb[4].mxu0 }
 0x320   :  { %v2788_v22 = vadd.f32 %v2134_v21, %v1732_v19  ;;  %v2136_v23 = vpop.f32.mrb[5].mxu0 }
 0x321   :  { %v2789_v24 = vadd.f32 %v2136_v23, %v1736_v20  ;;  %v2138_v25 = vpop.f32.mrb[6].mxu0 }
 0x322   :  { %v2141_v26 = vmax.f32 %v2788_v22, 0.0  ;;  %v2139_v27 = vpop.f32.mrb[7].mxu0 }
 0x323   :  { %v2142_v28 = vmax.f32 %v2789_v24, 0.0 }
 0x324   :  { %v2143_v31 = vpack.c.bf16 %v2141_v26, %v2141_v26 }
 0x325   :  { %v2144_v29 = vpack.c.bf16 %v2142_v28, %v2142_v28 }
 0x327   :  { %2312 = vmatprep.mubr.bf16.mxu1 %v2144_v29 }
 0x328   :  { %2313 = vmatmul.mubr.bf16.vlgmr.msra.gmra.mrb[8].mxu1 %v2143_v31 }
 0x329   :  { %2763 = vmatpush3.bf16.msra.mxu1 %v3235_v30  ;;  %2778 = vmatprep.mubr.msk.bf16.mxu1 %vm3397_vm1, %v3396_v17 }
 0x32a   :  { %2764 = vmatprep.subr.bf16.mxu1 %v3396_v17 }
 0x32d   :  { %2765 = vmatpush3.bf16.msra.mxu1 %v3236_v32 }
 0x32e   :  { %2766 = vmatprep.subr.bf16.mxu1 %v3396_v17 }
 0x331   :  { %2767 = vmatpush3.bf16.msra.mxu1 %v3237_v12 }
 0x332   :  { %2768 = vmatprep.subr.bf16.mxu1 %v3396_v17 }
 0x335   :  { %2769 = vmatpush3.bf16.msra.mxu1 %v3238_v11 }
 0x336   :  { %2770 = vmatprep.subr.bf16.mxu1 %v3396_v17 }
 0x339   :  { %2771 = vmatpush3.bf16.msra.mxu1 %v3239_v14 }
 0x33a   :  { %2772 = vmatprep.subr.bf16.mxu1 %v3396_v17 }
 0x33d   :  { %2773 = vmatpush3.bf16.msra.mxu1 %v3240_v33 }
 0x33e   :  { %2774 = vmatprep.subr.bf16.mxu1 %v3396_v17 }
 0x341   :  { %2775 = vmatpush3.bf16.msra.mxu1 %v3241_v34 }
 0x342   :  { %2776 = vmatprep.subr.bf16.mxu1 %v3396_v17 }
 0x345   :  { %2777 = vmatpush3.bf16.msra.mxu1 %v3242_v35 }
 0x3fb   :  { %v2747_v36 = vpop.f32.mrb[8].mxu1 }
 0x3fc   :  { %v2748_v38 = vpop.f32.mrb[9].mxu1 }
 0x3fd   :  { %v2749_v0 = vadd.f32 %v2748_v38, %v2747_v36  ;;  %v2750_v39 = vpop.f32.mrb[10].mxu1 }
 0x3fe   :  { %v2751_v40 = vpop.f32.mrb[11].mxu1 }
 0x3ff   :  { %v2315_v41 = vadd.f32 %v2749_v0, %v2705_v37 }
 0x401   :  { %v2320_v42 = vmax.f32 %v2315_v41, 0.0 }
 0x403   :  { %v2321_v43 = vpack.c.bf16 %v2320_v42, %v2320_v42 }
 0x405   :  { %2779 = vmatmul.mubr.bf16.vlgmr.msra.gmra.mrb[12].mxu1 %v2321_v43 }
 0x4d8   :  { %v2427_v10 = vpop.f32.mrb[12].mxu1 }
 0x4d9   :  { %v2428_v45 = vadd.f32 %v2722_v44, %v2427_v10  ;;  %v2780_v46 = vpop.f32.mrb[13].mxu1 }
 0x4da   :  { %v2430_v47 = vpop.f32.mrb[14].mxu1 }
 0x4db   :  { %v2433_v48 = vpack.c.bf16 %v2428_v45, %v2428_v45  ;;  %v2781_v49 = vpop.f32.mrb[15].mxu1 }
 0x4dd   :  { %2434 = vst [vmem:[%s3575_s9] sm:$0xf] %v2433_v48 }
 0x4de   :  { %2439 = vsyncpa [#allocation3], 1 }
 0x4df   :  { %2440 = vsyncpa [#allocation5], 1 }
 0x4e0   :  { %2441 = vsyncpa [#allocation8], 1 }
 0x4e1   :  { %2442 = vsyncpa [#allocation11], 1 }

</bundles_post_ra>
